<compile_context>
chip_gen: v5e
topology: v5e:2x2
jax: 0.10.0
libtpu: 0.0.40
codegen_flags: <defaults>
</compile_context>

<pallas_src>
import functools

import jax
import jax.numpy as jnp
from jax.experimental import pallas as pl
from jax.experimental.pallas import tpu as pltpu


# ---------------------------------------------------------------------------
# In-VMEM zero-filled spatial shifts (replace explicit padding).
# ---------------------------------------------------------------------------
def _shift_h(a, d):
    """b[h] = a[h + d] along axis 0 (leading/untiled dim -> cheap), zero fill."""
    zero = jnp.zeros((1,) + a.shape[1:], a.dtype)
    if d == 1:
        return jnp.concatenate([a[1:], zero], axis=0)
    if d == -1:
        return jnp.concatenate([zero, a[:-1]], axis=0)
    return a


def _shift_w(a, d):
    """b[:, w] = a[:, w + d] along axis 1 (sublane shift; only 2 per conv), zero fill."""
    zero = jnp.zeros((a.shape[0], 1, a.shape[2]), a.dtype)
    if d == 1:
        return jnp.concatenate([a[:, 1:, :], zero], axis=1)
    if d == -1:
        return jnp.concatenate([zero, a[:, :-1, :]], axis=1)
    return a


def _conv3x3_slab(a, w_ref, H, W, C):
    """3x3 'SAME' conv of a (H, W, C) f32 tile against w_ref (3, 3C, C) bf16.

    w_ref is indexed by dx (-1, 0, +1); its rows stack the dy = -1, 0, +1 taps
    along the input-channel axis.  One (H*W, 3C) @ (3C, C) MXU matmul per dx.
    Returns (H*W, C) f32.
    """
    acc = jnp.zeros((H * W, C), jnp.float32)
    for j, dx in enumerate((-1, 0, 1)):
        a_dx = _shift_w(a, dx)                                    # a_dx[h, w] = a[h, w+dx]
        stack = jnp.concatenate(                                  # channels: dy = -1, 0, +1
            [_shift_h(a_dx, -1), a_dx, _shift_h(a_dx, 1)], axis=-1)
        acc = acc + jnp.dot(
            stack.reshape(H * W, 3 * C).astype(jnp.bfloat16),
            w_ref[j], preferred_element_type=jnp.float32)
    return acc


# ---------------------------------------------------------------------------
# Fused kernel: the whole Hall_Module forward for one batch element.
# ---------------------------------------------------------------------------
def hall_fused_kernel(x_ref, w1_ref, s1_ref, b1_ref,
                      w31_ref, s31_ref, b31_ref,
                      w32_ref, s32_ref, b32_ref,
                      out_ref, *, H, W, C):
    # Stage 1: 1x1 conv + BN + ReLU (pointwise bf16 MXU matmul, f32 accumulate).
    # nn.ReLU(inplace=True) mutates x1 in the PyTorch forward, so only relu(x1)
    # flows downstream (both into conv3x3_1 and into the residual add).
    x2d = x_ref[0].reshape(H * W, C).astype(jnp.bfloat16)
    x1 = jnp.dot(x2d, w1_ref[...], preferred_element_type=jnp.float32)
    x1 = jnp.maximum(x1 * s1_ref[...] + b1_ref[...], 0.0)        # (H*W, C) f32, VMEM only

    # Stage 2: conv3x3_1(x1) + BN.
    x2 = _conv3x3_slab(x1.reshape(H, W, C), w31_ref, H, W, C)
    x2 = x2 * s31_ref[...] + b31_ref[...]

    # Stage 3: conv3x3_2(x1 + x2) + BN + ReLU (residual add fused in VMEM).
    y = _conv3x3_slab((x1 + x2).reshape(H, W, C), w32_ref, H, W, C)
    y = jnp.maximum(y * s32_ref[...] + b32_ref[...], 0.0)
    out_ref[...] = y.reshape(1, H, W, C).astype(out_ref.dtype)


def hall_module_pallas(x_nchw, kp):
    """NCHW f32 input -> NCHW f32 output (matches the PyTorch convention)."""
    x = jnp.transpose(x_nchw, (0, 2, 3, 1)).astype(jnp.float32)   # NHWC, C on lanes
    N, H, W, C = x.shape
    kernel = functools.partial(hall_fused_kernel, H=H, W=W, C=C)

    def wspec(shape):   # weights / scale / bias: resident across the batch grid
        return pl.BlockSpec(shape, lambda n: (0,) * len(shape))

    out = pl.pallas_call(
        kernel,
        out_shape=jax.ShapeDtypeStruct((N, H, W, C), jnp.float32),
        grid_spec=pltpu.PrefetchScalarGridSpec(
            num_scalar_prefetch=0,
            grid=(N,),
            in_specs=[
                pl.BlockSpec((1, H, W, C), lambda n: (n, 0, 0, 0)),   # x (f32)
                wspec((C, C)),             # w1 (bf16)
                wspec((1, C)),             # s1 (f32)
                wspec((1, C)),             # b1
                wspec((3, 3 * C, C)),      # conv3x3_1 weights, dx-stacked (bf16)
                wspec((1, C)),             # s31
                wspec((1, C)),             # b31
                wspec((3, 3 * C, C)),      # conv3x3_2 weights, dx-stacked (bf16)
                wspec((1, C)),             # s32
                wspec((1, C)),             # b32
            ],
            out_specs=pl.BlockSpec((1, H, W, C), lambda n: (n, 0, 0, 0)),
        ),
        compiler_params=pltpu.CompilerParams(
            dimension_semantics=("parallel",),
            # Explicit VMEM budget (demo uses ~2 MiB); fits every generation.
            vmem_limit_bytes=48 * 1024 * 1024,
        ),
    )(x, kp["w1"], kp["s1"], kp["b1"],
      kp["w31"], kp["s31"], kp["b31"],
      kp["w32"], kp["s32"], kp["b32"])
    return jnp.transpose(out, (0, 3, 1, 2))


# ---------------------------------------------------------------------------
# Parameter construction (deterministic, synthetic) + BN folding (eval mode).
# ---------------------------------------------------------------------------
def make_params(key, C):
    ks = jax.random.split(key, 12)
    eps = 1e-5

    def conv_bn(kw, kb, kg, kbeta, km, kv, taps):
        # conv weight stored as (taps, C_in, C_out); taps ordered dy-major, dx-minor.
        w = 0.05 * jax.random.normal(kw, (taps, C, C), jnp.float32) / jnp.sqrt(C)
        b = 0.05 * jax.random.normal(kb, (C,), jnp.float32)
        gamma = 1.0 + 0.1 * jax.random.normal(kg, (C,), jnp.float32)
        beta = 0.1 * jax.random.normal(kbeta, (C,), jnp.float32)
        mean = 0.1 * jax.random.normal(km, (C,), jnp.float32)
        var = 1.0 + 0.1 * jnp.abs(jax.random.normal(kv, (C,), jnp.float32))
        scale = gamma / jnp.sqrt(var + eps)
        bias_eff = scale * (b - mean) + beta
        return w, scale.reshape(1, C), bias_eff.reshape(1, C)

    w1, s1, b1 = conv_bn(*ks[0:6], taps=1)
    w31, s31, b31 = conv_bn(*ks[6:12], taps=9)
    ks2 = jax.random.split(ks[-1], 6)
    w32, s32, b32 = conv_bn(*ks2, taps=9)
    return dict(w1=w1[0], s1=s1, b1=b1,
                w31=w31, s31=s31, b31=b31,
                w32=w32, s32=s32, b32=b32)


def prep_params(p, C):
    """Kernel-side layout: bf16 weights; 3x3 weights re-stacked to (3, 3C, C)
    where index = dx+1 and rows stack the dy = -1, 0, +1 taps along C_in."""
    def stack3x3(w9):
        w = w9.reshape(3, 3, C, C)              # (dy, dx, Cin, Cout)
        w = jnp.transpose(w, (1, 0, 2, 3))      # (dx, dy, Cin, Cout)
        return w.reshape(3, 3 * C, C).astype(jnp.bfloat16)

    return dict(w1=p["w1"].astype(jnp.bfloat16), s1=p["s1"], b1=p["b1"],
                w31=stack3x3(p["w31"]), s31=p["s31"], b31=p["b31"],
                w32=stack3x3(p["w32"]), s32=p["s32"], b32=p["b32"])


# ---------------------------------------------------------------------------
# Pure-JAX reference (lax conv) with the SAME precision policy as the kernel
# (bf16 matmul inputs/weights, f32 accumulation, f32 BN/residual math) and the
# same inplace-ReLU semantics (residual adds relu(x1)).
# ---------------------------------------------------------------------------
def hall_module_ref(x_nchw, p):
    x = jnp.transpose(x_nchw, (0, 2, 3, 1)).astype(jnp.float32)
    C = x.shape[-1]
    bf = jnp.bfloat16

    def conv(xin, w_taps, ksize):
        w = w_taps.reshape(ksize, ksize, C, C).astype(bf)
        return jax.lax.conv_general_dilated(
            xin.astype(bf), w, window_strides=(1, 1), padding="SAME",
            dimension_numbers=("NHWC", "HWIO", "NHWC"),
            preferred_element_type=jnp.float32)

    def bn(y, s, b):
        return y * s.reshape(1, 1, 1, -1) + b.reshape(1, 1, 1, -1)

    x1 = jnp.maximum(bn(conv(x, p["w1"][None], 1), p["s1"], p["b1"]), 0.0)
    x2 = bn(conv(x1, p["w31"], 3), p["s31"], p["b31"])
    out = jnp.maximum(bn(conv(x1 + x2, p["w32"], 3), p["s32"], p["b32"]), 0.0)
    return jnp.transpose(out, (0, 3, 1, 2))


if __name__ == "__main__":
    # Small, module-consistent shapes: N=2, C=128 (stand-in for 2048), H=W=8.
    N, C, H, W = 2, 128, 8, 8
    key = jax.random.PRNGKey(0)
    kx, kp = jax.random.split(key)
    x = jax.random.normal(kx, (N, C, H, W), jnp.float32)
    params = make_params(kp, C)
    kparams = prep_params(params, C)

    out = jax.block_until_ready(hall_module_pallas(x, kparams))
    ref = jax.block_until_ready(hall_module_ref(x, params))

    assert out.shape == (N, C, H, W)
    assert jnp.allclose(out, ref, atol=2e-3, rtol=2e-3), "mismatch vs reference"
    print("KERNEL_OK")
</pallas_src>

<mosaic_0001>
module attributes {stable_mosaic.version = 11 : i64} {
  func.func @hall_fused_kernel(%arg0: i32, %arg1: memref<1x8x8x128xf32, #tpu.memory_space<vmem>>, %arg2: memref<128x128xbf16, #tpu.memory_space<vmem>>, %arg3: memref<1x128xf32, #tpu.memory_space<vmem>>, %arg4: memref<1x128xf32, #tpu.memory_space<vmem>>, %arg5: memref<3x384x128xbf16, #tpu.memory_space<vmem>>, %arg6: memref<1x128xf32, #tpu.memory_space<vmem>>, %arg7: memref<1x128xf32, #tpu.memory_space<vmem>>, %arg8: memref<3x384x128xbf16, #tpu.memory_space<vmem>>, %arg9: memref<1x128xf32, #tpu.memory_space<vmem>>, %arg10: memref<1x128xf32, #tpu.memory_space<vmem>>, %arg11: memref<1x8x8x128xf32, #tpu.memory_space<vmem>>) attributes {dimension_semantics = [#tpu.dimension_semantics<parallel>], iteration_bounds = array<i64: 2>, scalar_prefetch = 0 : i64, scratch_operands = 0 : i64, tpu.core_type = #tpu.core_type<tc>, window_params = [{transform_indices = @transform_0, window_bounds = array<i64: 1, 8, 8, 128>}, {pipeline_mode = #tpu.pipeline_mode<synchronous>, transform_indices = @transform_1, window_bounds = array<i64: 128, 128>}, {pipeline_mode = #tpu.pipeline_mode<synchronous>, transform_indices = @transform_2, window_bounds = array<i64: 1, 128>}, {pipeline_mode = #tpu.pipeline_mode<synchronous>, transform_indices = @transform_3, window_bounds = array<i64: 1, 128>}, {pipeline_mode = #tpu.pipeline_mode<synchronous>, transform_indices = @transform_4, window_bounds = array<i64: 3, 384, 128>}, {pipeline_mode = #tpu.pipeline_mode<synchronous>, transform_indices = @transform_5, window_bounds = array<i64: 1, 128>}, {pipeline_mode = #tpu.pipeline_mode<synchronous>, transform_indices = @transform_6, window_bounds = array<i64: 1, 128>}, {pipeline_mode = #tpu.pipeline_mode<synchronous>, transform_indices = @transform_7, window_bounds = array<i64: 3, 384, 128>}, {pipeline_mode = #tpu.pipeline_mode<synchronous>, transform_indices = @transform_8, window_bounds = array<i64: 1, 128>}, {pipeline_mode = #tpu.pipeline_mode<synchronous>, transform_indices = @transform_9, window_bounds = array<i64: 1, 128>}, {transform_indices = @transform_10, window_bounds = array<i64: 1, 8, 8, 128>}]} {
    %c0 = arith.constant 0 : index
    %c0_0 = arith.constant 0 : index
    %c0_1 = arith.constant 0 : index
    %c0_2 = arith.constant 0 : index
    %0 = vector.load %arg1[%c0, %c0_0, %c0_1, %c0_2] : memref<1x8x8x128xf32, #tpu.memory_space<vmem>>, vector<1x8x8x128xf32>
    %1 = vector.shape_cast %0 : vector<1x8x8x128xf32> to vector<8x8x128xf32>
    %2 = vector.shape_cast %1 : vector<8x8x128xf32> to vector<64x128xf32>
    %3 = arith.truncf %2 : vector<64x128xf32> to vector<64x128xbf16>
    %c0_3 = arith.constant 0 : index
    %c0_4 = arith.constant 0 : index
    %4 = vector.load %arg2[%c0_3, %c0_4] : memref<128x128xbf16, #tpu.memory_space<vmem>>, vector<128x128xbf16>
    %cst = arith.constant dense<0.000000e+00> : vector<64x128xf32>
    %5 = tpu.matmul %3, %4, %cst {dimension_numbers = #tpu.dot_dimension_numbers<[1], [0], [0], [1], [0, 0, 1, 1], [], []>} : vector<64x128xbf16>, vector<128x128xbf16>, vector<64x128xf32> -> vector<64x128xf32>
    %c0_5 = arith.constant 0 : index
    %c0_6 = arith.constant 0 : index
    %6 = vector.load %arg3[%c0_5, %c0_6] : memref<1x128xf32, #tpu.memory_space<vmem>>, vector<1x128xf32>
    %7 = vector.broadcast %6 : vector<1x128xf32> to vector<64x128xf32>
    %8 = arith.mulf %5, %7 : vector<64x128xf32>
    %c0_7 = arith.constant 0 : index
    %c0_8 = arith.constant 0 : index
    %9 = vector.load %arg4[%c0_7, %c0_8] : memref<1x128xf32, #tpu.memory_space<vmem>>, vector<1x128xf32>
    %10 = vector.broadcast %9 : vector<1x128xf32> to vector<64x128xf32>
    %11 = arith.addf %8, %10 : vector<64x128xf32>
    %cst_9 = arith.constant 0.000000e+00 : f32
    %12 = vector.broadcast %cst_9 : f32 to vector<64x128xf32>
    %13 = arith.maximumf %11, %12 : vector<64x128xf32>
    %14 = vector.shape_cast %13 : vector<64x128xf32> to vector<8x8x128xf32>
    %cst_10 = arith.constant 0.000000e+00 : f32
    %15 = vector.broadcast %cst_10 : f32 to vector<64x128xf32>
    %cst_11 = arith.constant 0.000000e+00 : f32
    %16 = vector.broadcast %cst_11 : f32 to vector<8x1x128xf32>
    %17 = vector.extract_strided_slice %14 {offsets = [0, 0, 0], sizes = [8, 7, 128], strides = [1, 1, 1]} : vector<8x8x128xf32> to vector<8x7x128xf32>
    %18 = tpu.concatenate %16, %17 in 1 : vector<8x1x128xf32>, vector<8x7x128xf32> -> vector<8x8x128xf32>
    %cst_12 = arith.constant 0.000000e+00 : f32
    %19 = vector.broadcast %cst_12 : f32 to vector<1x8x128xf32>
    %20 = vector.extract_strided_slice %18 {offsets = [0, 0, 0], sizes = [7, 8, 128], strides = [1, 1, 1]} : vector<8x8x128xf32> to vector<7x8x128xf32>
    %21 = tpu.concatenate %19, %20 in 0 : vector<1x8x128xf32>, vector<7x8x128xf32> -> vector<8x8x128xf32>
    %cst_13 = arith.constant 0.000000e+00 : f32
    %22 = vector.broadcast %cst_13 : f32 to vector<1x8x128xf32>
    %23 = vector.extract_strided_slice %18 {offsets = [1, 0, 0], sizes = [7, 8, 128], strides = [1, 1, 1]} : vector<8x8x128xf32> to vector<7x8x128xf32>
    %24 = tpu.concatenate %23, %22 in 0 : vector<7x8x128xf32>, vector<1x8x128xf32> -> vector<8x8x128xf32>
    %25 = tpu.concatenate %21, %18, %24 in 2 : vector<8x8x128xf32>, vector<8x8x128xf32>, vector<8x8x128xf32> -> vector<8x8x384xf32>
    %26 = vector.shape_cast %25 : vector<8x8x384xf32> to vector<64x384xf32>
    %27 = arith.truncf %26 : vector<64x384xf32> to vector<64x384xbf16>
    %c0_14 = arith.constant 0 : index
    %c0_15 = arith.constant 0 : index
    %c0_16 = arith.constant 0 : index
    %28 = vector.load %arg5[%c0_14, %c0_15, %c0_16] : memref<3x384x128xbf16, #tpu.memory_space<vmem>>, vector<1x384x128xbf16>
    %29 = vector.shape_cast %28 : vector<1x384x128xbf16> to vector<384x128xbf16>
    %cst_17 = arith.constant dense<0.000000e+00> : vector<64x128xf32>
    %30 = tpu.matmul %27, %29, %cst_17 {dimension_numbers = #tpu.dot_dimension_numbers<[1], [0], [0], [1], [0, 0, 1, 1], [], []>} : vector<64x384xbf16>, vector<384x128xbf16>, vector<64x128xf32> -> vector<64x128xf32>
    %31 = arith.addf %15, %30 : vector<64x128xf32>
    %cst_18 = arith.constant 0.000000e+00 : f32
    %32 = vector.broadcast %cst_18 : f32 to vector<1x8x128xf32>
    %33 = vector.extract_strided_slice %14 {offsets = [0, 0, 0], sizes = [7, 8, 128], strides = [1, 1, 1]} : vector<8x8x128xf32> to vector<7x8x128xf32>
    %34 = tpu.concatenate %32, %33 in 0 : vector<1x8x128xf32>, vector<7x8x128xf32> -> vector<8x8x128xf32>
    %cst_19 = arith.constant 0.000000e+00 : f32
    %35 = vector.broadcast %cst_19 : f32 to vector<1x8x128xf32>
    %36 = vector.extract_strided_slice %14 {offsets = [1, 0, 0], sizes = [7, 8, 128], strides = [1, 1, 1]} : vector<8x8x128xf32> to vector<7x8x128xf32>
    %37 = tpu.concatenate %36, %35 in 0 : vector<7x8x128xf32>, vector<1x8x128xf32> -> vector<8x8x128xf32>
    %38 = tpu.concatenate %34, %14, %37 in 2 : vector<8x8x128xf32>, vector<8x8x128xf32>, vector<8x8x128xf32> -> vector<8x8x384xf32>
    %39 = vector.shape_cast %38 : vector<8x8x384xf32> to vector<64x384xf32>
    %40 = arith.truncf %39 : vector<64x384xf32> to vector<64x384xbf16>
    %c1 = arith.constant 1 : index
    %c0_20 = arith.constant 0 : index
    %c0_21 = arith.constant 0 : index
    %41 = vector.load %arg5[%c1, %c0_20, %c0_21] : memref<3x384x128xbf16, #tpu.memory_space<vmem>>, vector<1x384x128xbf16>
    %42 = vector.shape_cast %41 : vector<1x384x128xbf16> to vector<384x128xbf16>
    %cst_22 = arith.constant dense<0.000000e+00> : vector<64x128xf32>
    %43 = tpu.matmul %40, %42, %cst_22 {dimension_numbers = #tpu.dot_dimension_numbers<[1], [0], [0], [1], [0, 0, 1, 1], [], []>} : vector<64x384xbf16>, vector<384x128xbf16>, vector<64x128xf32> -> vector<64x128xf32>
    %44 = arith.addf %31, %43 : vector<64x128xf32>
    %cst_23 = arith.constant 0.000000e+00 : f32
    %45 = vector.broadcast %cst_23 : f32 to vector<8x1x128xf32>
    %46 = vector.extract_strided_slice %14 {offsets = [0, 1, 0], sizes = [8, 7, 128], strides = [1, 1, 1]} : vector<8x8x128xf32> to vector<8x7x128xf32>
    %47 = tpu.concatenate %46, %45 in 1 : vector<8x7x128xf32>, vector<8x1x128xf32> -> vector<8x8x128xf32>
    %cst_24 = arith.constant 0.000000e+00 : f32
    %48 = vector.broadcast %cst_24 : f32 to vector<1x8x128xf32>
    %49 = vector.extract_strided_slice %47 {offsets = [0, 0, 0], sizes = [7, 8, 128], strides = [1, 1, 1]} : vector<8x8x128xf32> to vector<7x8x128xf32>
    %50 = tpu.concatenate %48, %49 in 0 : vector<1x8x128xf32>, vector<7x8x128xf32> -> vector<8x8x128xf32>
    %cst_25 = arith.constant 0.000000e+00 : f32
    %51 = vector.broadcast %cst_25 : f32 to vector<1x8x128xf32>
    %52 = vector.extract_strided_slice %47 {offsets = [1, 0, 0], sizes = [7, 8, 128], strides = [1, 1, 1]} : vector<8x8x128xf32> to vector<7x8x128xf32>
    %53 = tpu.concatenate %52, %51 in 0 : vector<7x8x128xf32>, vector<1x8x128xf32> -> vector<8x8x128xf32>
    %54 = tpu.concatenate %50, %47, %53 in 2 : vector<8x8x128xf32>, vector<8x8x128xf32>, vector<8x8x128xf32> -> vector<8x8x384xf32>
    %55 = vector.shape_cast %54 : vector<8x8x384xf32> to vector<64x384xf32>
    %56 = arith.truncf %55 : vector<64x384xf32> to vector<64x384xbf16>
    %c2 = arith.constant 2 : index
    %c0_26 = arith.constant 0 : index
    %c0_27 = arith.constant 0 : index
    %57 = vector.load %arg5[%c2, %c0_26, %c0_27] : memref<3x384x128xbf16, #tpu.memory_space<vmem>>, vector<1x384x128xbf16>
    %58 = vector.shape_cast %57 : vector<1x384x128xbf16> to vector<384x128xbf16>
    %cst_28 = arith.constant dense<0.000000e+00> : vector<64x128xf32>
    %59 = tpu.matmul %56, %58, %cst_28 {dimension_numbers = #tpu.dot_dimension_numbers<[1], [0], [0], [1], [0, 0, 1, 1], [], []>} : vector<64x384xbf16>, vector<384x128xbf16>, vector<64x128xf32> -> vector<64x128xf32>
    %60 = arith.addf %44, %59 : vector<64x128xf32>
    %c0_29 = arith.constant 0 : index
    %c0_30 = arith.constant 0 : index
    %61 = vector.load %arg6[%c0_29, %c0_30] : memref<1x128xf32, #tpu.memory_space<vmem>>, vector<1x128xf32>
    %62 = vector.broadcast %61 : vector<1x128xf32> to vector<64x128xf32>
    %63 = arith.mulf %60, %62 : vector<64x128xf32>
    %c0_31 = arith.constant 0 : index
    %c0_32 = arith.constant 0 : index
    %64 = vector.load %arg7[%c0_31, %c0_32] : memref<1x128xf32, #tpu.memory_space<vmem>>, vector<1x128xf32>
    %65 = vector.broadcast %64 : vector<1x128xf32> to vector<64x128xf32>
    %66 = arith.addf %63, %65 : vector<64x128xf32>
    %67 = arith.addf %13, %66 : vector<64x128xf32>
    %68 = vector.shape_cast %67 : vector<64x128xf32> to vector<8x8x128xf32>
    %cst_33 = arith.constant 0.000000e+00 : f32
    %69 = vector.broadcast %cst_33 : f32 to vector<64x128xf32>
    %cst_34 = arith.constant 0.000000e+00 : f32
    %70 = vector.broadcast %cst_34 : f32 to vector<8x1x128xf32>
    %71 = vector.extract_strided_slice %68 {offsets = [0, 0, 0], sizes = [8, 7, 128], strides = [1, 1, 1]} : vector<8x8x128xf32> to vector<8x7x128xf32>
    %72 = tpu.concatenate %70, %71 in 1 : vector<8x1x128xf32>, vector<8x7x128xf32> -> vector<8x8x128xf32>
    %cst_35 = arith.constant 0.000000e+00 : f32
    %73 = vector.broadcast %cst_35 : f32 to vector<1x8x128xf32>
    %74 = vector.extract_strided_slice %72 {offsets = [0, 0, 0], sizes = [7, 8, 128], strides = [1, 1, 1]} : vector<8x8x128xf32> to vector<7x8x128xf32>
    %75 = tpu.concatenate %73, %74 in 0 : vector<1x8x128xf32>, vector<7x8x128xf32> -> vector<8x8x128xf32>
    %cst_36 = arith.constant 0.000000e+00 : f32
    %76 = vector.broadcast %cst_36 : f32 to vector<1x8x128xf32>
    %77 = vector.extract_strided_slice %72 {offsets = [1, 0, 0], sizes = [7, 8, 128], strides = [1, 1, 1]} : vector<8x8x128xf32> to vector<7x8x128xf32>
    %78 = tpu.concatenate %77, %76 in 0 : vector<7x8x128xf32>, vector<1x8x128xf32> -> vector<8x8x128xf32>
    %79 = tpu.concatenate %75, %72, %78 in 2 : vector<8x8x128xf32>, vector<8x8x128xf32>, vector<8x8x128xf32> -> vector<8x8x384xf32>
    %80 = vector.shape_cast %79 : vector<8x8x384xf32> to vector<64x384xf32>
    %81 = arith.truncf %80 : vector<64x384xf32> to vector<64x384xbf16>
    %c0_37 = arith.constant 0 : index
    %c0_38 = arith.constant 0 : index
    %c0_39 = arith.constant 0 : index
    %82 = vector.load %arg8[%c0_37, %c0_38, %c0_39] : memref<3x384x128xbf16, #tpu.memory_space<vmem>>, vector<1x384x128xbf16>
    %83 = vector.shape_cast %82 : vector<1x384x128xbf16> to vector<384x128xbf16>
    %cst_40 = arith.constant dense<0.000000e+00> : vector<64x128xf32>
    %84 = tpu.matmul %81, %83, %cst_40 {dimension_numbers = #tpu.dot_dimension_numbers<[1], [0], [0], [1], [0, 0, 1, 1], [], []>} : vector<64x384xbf16>, vector<384x128xbf16>, vector<64x128xf32> -> vector<64x128xf32>
    %85 = arith.addf %69, %84 : vector<64x128xf32>
    %cst_41 = arith.constant 0.000000e+00 : f32
    %86 = vector.broadcast %cst_41 : f32 to vector<1x8x128xf32>
    %87 = vector.extract_strided_slice %68 {offsets = [0, 0, 0], sizes = [7, 8, 128], strides = [1, 1, 1]} : vector<8x8x128xf32> to vector<7x8x128xf32>
    %88 = tpu.concatenate %86, %87 in 0 : vector<1x8x128xf32>, vector<7x8x128xf32> -> vector<8x8x128xf32>
    %cst_42 = arith.constant 0.000000e+00 : f32
    %89 = vector.broadcast %cst_42 : f32 to vector<1x8x128xf32>
    %90 = vector.extract_strided_slice %68 {offsets = [1, 0, 0], sizes = [7, 8, 128], strides = [1, 1, 1]} : vector<8x8x128xf32> to vector<7x8x128xf32>
    %91 = tpu.concatenate %90, %89 in 0 : vector<7x8x128xf32>, vector<1x8x128xf32> -> vector<8x8x128xf32>
    %92 = tpu.concatenate %88, %68, %91 in 2 : vector<8x8x128xf32>, vector<8x8x128xf32>, vector<8x8x128xf32> -> vector<8x8x384xf32>
    %93 = vector.shape_cast %92 : vector<8x8x384xf32> to vector<64x384xf32>
    %94 = arith.truncf %93 : vector<64x384xf32> to vector<64x384xbf16>
    %c1_43 = arith.constant 1 : index
    %c0_44 = arith.constant 0 : index
    %c0_45 = arith.constant 0 : index
    %95 = vector.load %arg8[%c1_43, %c0_44, %c0_45] : memref<3x384x128xbf16, #tpu.memory_space<vmem>>, vector<1x384x128xbf16>
    %96 = vector.shape_cast %95 : vector<1x384x128xbf16> to vector<384x128xbf16>
    %cst_46 = arith.constant dense<0.000000e+00> : vector<64x128xf32>
    %97 = tpu.matmul %94, %96, %cst_46 {dimension_numbers = #tpu.dot_dimension_numbers<[1], [0], [0], [1], [0, 0, 1, 1], [], []>} : vector<64x384xbf16>, vector<384x128xbf16>, vector<64x128xf32> -> vector<64x128xf32>
    %98 = arith.addf %85, %97 : vector<64x128xf32>
    %cst_47 = arith.constant 0.000000e+00 : f32
    %99 = vector.broadcast %cst_47 : f32 to vector<8x1x128xf32>
    %100 = vector.extract_strided_slice %68 {offsets = [0, 1, 0], sizes = [8, 7, 128], strides = [1, 1, 1]} : vector<8x8x128xf32> to vector<8x7x128xf32>
    %101 = tpu.concatenate %100, %99 in 1 : vector<8x7x128xf32>, vector<8x1x128xf32> -> vector<8x8x128xf32>
    %cst_48 = arith.constant 0.000000e+00 : f32
    %102 = vector.broadcast %cst_48 : f32 to vector<1x8x128xf32>
    %103 = vector.extract_strided_slice %101 {offsets = [0, 0, 0], sizes = [7, 8, 128], strides = [1, 1, 1]} : vector<8x8x128xf32> to vector<7x8x128xf32>
    %104 = tpu.concatenate %102, %103 in 0 : vector<1x8x128xf32>, vector<7x8x128xf32> -> vector<8x8x128xf32>
    %cst_49 = arith.constant 0.000000e+00 : f32
    %105 = vector.broadcast %cst_49 : f32 to vector<1x8x128xf32>
    %106 = vector.extract_strided_slice %101 {offsets = [1, 0, 0], sizes = [7, 8, 128], strides = [1, 1, 1]} : vector<8x8x128xf32> to vector<7x8x128xf32>
    %107 = tpu.concatenate %106, %105 in 0 : vector<7x8x128xf32>, vector<1x8x128xf32> -> vector<8x8x128xf32>
    %108 = tpu.concatenate %104, %101, %107 in 2 : vector<8x8x128xf32>, vector<8x8x128xf32>, vector<8x8x128xf32> -> vector<8x8x384xf32>
    %109 = vector.shape_cast %108 : vector<8x8x384xf32> to vector<64x384xf32>
    %110 = arith.truncf %109 : vector<64x384xf32> to vector<64x384xbf16>
    %c2_50 = arith.constant 2 : index
    %c0_51 = arith.constant 0 : index
    %c0_52 = arith.constant 0 : index
    %111 = vector.load %arg8[%c2_50, %c0_51, %c0_52] : memref<3x384x128xbf16, #tpu.memory_space<vmem>>, vector<1x384x128xbf16>
    %112 = vector.shape_cast %111 : vector<1x384x128xbf16> to vector<384x128xbf16>
    %cst_53 = arith.constant dense<0.000000e+00> : vector<64x128xf32>
    %113 = tpu.matmul %110, %112, %cst_53 {dimension_numbers = #tpu.dot_dimension_numbers<[1], [0], [0], [1], [0, 0, 1, 1], [], []>} : vector<64x384xbf16>, vector<384x128xbf16>, vector<64x128xf32> -> vector<64x128xf32>
    %114 = arith.addf %98, %113 : vector<64x128xf32>
    %c0_54 = arith.constant 0 : index
    %c0_55 = arith.constant 0 : index
    %115 = vector.load %arg9[%c0_54, %c0_55] : memref<1x128xf32, #tpu.memory_space<vmem>>, vector<1x128xf32>
    %116 = vector.broadcast %115 : vector<1x128xf32> to vector<64x128xf32>
    %117 = arith.mulf %114, %116 : vector<64x128xf32>
    %c0_56 = arith.constant 0 : index
    %c0_57 = arith.constant 0 : index
    %118 = vector.load %arg10[%c0_56, %c0_57] : memref<1x128xf32, #tpu.memory_space<vmem>>, vector<1x128xf32>
    %119 = vector.broadcast %118 : vector<1x128xf32> to vector<64x128xf32>
    %120 = arith.addf %117, %119 : vector<64x128xf32>
    %cst_58 = arith.constant 0.000000e+00 : f32
    %121 = vector.broadcast %cst_58 : f32 to vector<64x128xf32>
    %122 = arith.maximumf %120, %121 : vector<64x128xf32>
    %123 = vector.shape_cast %122 : vector<64x128xf32> to vector<1x8x8x128xf32>
    %c0_59 = arith.constant 0 : index
    %c0_60 = arith.constant 0 : index
    %c0_61 = arith.constant 0 : index
    %c0_62 = arith.constant 0 : index
    %124 = vector.load %arg11[%c0_59, %c0_60, %c0_61, %c0_62] : memref<1x8x8x128xf32, #tpu.memory_space<vmem>>, vector<1x8x8x128xf32>
    tpu.vector_store %arg11[%c0_59, %c0_60, %c0_61, %c0_62], %123 {strides = array<i32>} : memref<1x8x8x128xf32, #tpu.memory_space<vmem>>, vector<1x8x8x128xf32>,
    return
  }
  func.func @transform_0(%arg0: i32) -> (i32, i32, i32, i32) {
    %c0_i32 = arith.constant 0 : i32
    %c0_i32_0 = arith.constant 0 : i32
    %c0_i32_1 = arith.constant 0 : i32
    %c0_i32_2 = arith.constant 0 : i32
    return %arg0, %c0_i32, %c0_i32_0, %c0_i32_1 : i32, i32, i32, i32
  }
  func.func @transform_1(%arg0: i32) -> (i32, i32) {
    %c0_i32 = arith.constant 0 : i32
    %c0_i32_0 = arith.constant 0 : i32
    %c0_i32_1 = arith.constant 0 : i32
    return %c0_i32, %c0_i32_0 : i32, i32
  }
  func.func @transform_2(%arg0: i32) -> (i32, i32) {
    %c0_i32 = arith.constant 0 : i32
    %c0_i32_0 = arith.constant 0 : i32
    %c0_i32_1 = arith.constant 0 : i32
    return %c0_i32, %c0_i32_0 : i32, i32
  }
  func.func @transform_3(%arg0: i32) -> (i32, i32) {
    %c0_i32 = arith.constant 0 : i32
    %c0_i32_0 = arith.constant 0 : i32
    %c0_i32_1 = arith.constant 0 : i32
    return %c0_i32, %c0_i32_0 : i32, i32
  }
  func.func @transform_4(%arg0: i32) -> (i32, i32, i32) {
    %c0_i32 = arith.constant 0 : i32
    %c0_i32_0 = arith.constant 0 : i32
    %c0_i32_1 = arith.constant 0 : i32
    %c0_i32_2 = arith.constant 0 : i32
    return %c0_i32, %c0_i32_0, %c0_i32_1 : i32, i32, i32
  }
  func.func @transform_5(%arg0: i32) -> (i32, i32) {
    %c0_i32 = arith.constant 0 : i32
    %c0_i32_0 = arith.constant 0 : i32
    %c0_i32_1 = arith.constant 0 : i32
    return %c0_i32, %c0_i32_0 : i32, i32
  }
  func.func @transform_6(%arg0: i32) -> (i32, i32) {
    %c0_i32 = arith.constant 0 : i32
    %c0_i32_0 = arith.constant 0 : i32
    %c0_i32_1 = arith.constant 0 : i32
    return %c0_i32, %c0_i32_0 : i32, i32
  }
  func.func @transform_7(%arg0: i32) -> (i32, i32, i32) {
    %c0_i32 = arith.constant 0 : i32
    %c0_i32_0 = arith.constant 0 : i32
    %c0_i32_1 = arith.constant 0 : i32
    %c0_i32_2 = arith.constant 0 : i32
    return %c0_i32, %c0_i32_0, %c0_i32_1 : i32, i32, i32
  }
  func.func @transform_8(%arg0: i32) -> (i32, i32) {
    %c0_i32 = arith.constant 0 : i32
    %c0_i32_0 = arith.constant 0 : i32
    %c0_i32_1 = arith.constant 0 : i32
    return %c0_i32, %c0_i32_0 : i32, i32
  }
  func.func @transform_9(%arg0: i32) -> (i32, i32) {
    %c0_i32 = arith.constant 0 : i32
    %c0_i32_0 = arith.constant 0 : i32
    %c0_i32_1 = arith.constant 0 : i32
    return %c0_i32, %c0_i32_0 : i32, i32
  }
  func.func @transform_10(%arg0: i32) -> (i32, i32, i32, i32) {
    %c0_i32 = arith.constant 0 : i32
    %c0_i32_0 = arith.constant 0 : i32
    %c0_i32_1 = arith.constant 0 : i32
    %c0_i32_2 = arith.constant 0 : i32
    return %arg0, %c0_i32, %c0_i32_0, %c0_i32_1 : i32, i32, i32, i32
  }
}

</mosaic_0001>

<bundles_post_ra>
// kernel: tpu_custom_call.1
= control target key start
LH: loop header
LB: loop body
LE: loop exit
PB: predicated region body
PF: predicated region fallthrough
CT: control target
= control target key end

     0   :  { %s4744_s0 = inlined_call_operand.hbm [shape: f32[2,8,8,128], index: 0, kind: input, shape index: {}]   ;;  %s4745_s1 = inlined_call_operand.hbm [shape: bf16[128,128], index: 1, kind: input, shape index: {}]   ;;  %s4746_s2 = inlined_call_operand.vmem [shape: f32[1,128], index: 2, kind: input, shape index: {}]   ;;  %s4747_s3 = inlined_call_operand.vmem [shape: f32[1,128], index: 3, kind: input, shape index: {}]   ;;  %s4748_s4 = inlined_call_operand.hbm [shape: bf16[3,384,128], index: 4, kind: input, shape index: {}]   ;;  %s4749_s5 = inlined_call_operand.vmem [shape: f32[1,128], index: 5, kind: input, shape index: {}]   ;;  %s4750_s6 = inlined_call_operand.vmem [shape: f32[1,128], index: 6, kind: input, shape index: {}]   ;;  %s4751_s7 = inlined_call_operand.hbm [shape: bf16[3,384,128], index: 7, kind: input, shape index: {}]   ;;  %s4752_s8 = inlined_call_operand.vmem [shape: f32[1,128], index: 8, kind: input, shape index: {}]   ;;  %s4753_s9 = inlined_call_operand.vmem [shape: f32[1,128], index: 9, kind: input, shape index: {}]   ;;  %s4754_s10 = inlined_call_operand.hbm [shape: f32[2,8,8,128], index: 10, kind: output, shape index: {}]  }
   0x1   :  { %4764 = sst [smem:[#allocation22_spill]] %s4745_s1 }
   0x2   :  { %4765 = sst [smem:[#allocation23_spill]] %s4748_s4 }
   0x3   :  { %4766 = sst [smem:[#allocation24_spill]] %s4751_s7 }
   0x4   :  { %15 = vsyncpa [#allocation3], 0 }
   0x5   :  { %17 = vsyncpa [#allocation3 + $0x1], 0 }
   0x6   :  { %18 = vsyncpa [#allocation6], 0 }
   0x7   :  { %19 = vsyncpa [#allocation9], 0 }
   0x8   :  { %20 = vsyncpa [#allocation4], 0 }
   0x9   :  { %22 = vsyncpa [#allocation4 + $0x1], 0  ;;  %s3966_s13 = smov 0   ;;  %s3968_s14 = smov 0  }
   0xa   :  { %s3970_s15 = smov 0   ;;  %s3972_s16 = smov 0  }
   0xb LB: > { %s3987_s17 = sadd.s32 4294967295, %s3898_s16   ;;  %s2619_s18 = sadd.s32 4294967294, %s3898_s16   ;;  %s3898_s16 = sphi %s3972_s16, %s4809_s16   ;;  %s3894_s15 = sphi %s3970_s15, %s4808_s15   ;;  %s3890_s14 = sphi %s3968_s14, %s4807_s14   ;;  %s3886_s13 = sphi %s3966_s13, %s4806_s13  }
   0xc   : > { %p48_p0 = scmp.ne.s32.totalorder %s3890_s14, %s3886_s13  ;;  %p49_p1 = scmp.eq.s32.totalorder %s3987_s17, 0 }
   0xd   : > { %p261_p2 = scmp.eq.s32.totalorder %s3987_s17, 1  ;;  %p267_p3 = scmp.eq.s32.totalorder %s2619_s18, 1 }
   0xe   : > { %p3996_p4 = por %p49_p1, %p48_p0  ;;  %p2620_p5 = scmp.ge.s32.totalorder %s3898_s16, 1 }
   0xf   : > { %p4001_p6 = por %p267_p3, %p48_p0  ;;  %p274_p7 = scmp.lt.s32.totalorder %s3898_s16, 3 }
  0x10   : > { %s4769_s1 = sld [smem:[#allocation22_spill]]  ;;  %s3900_s25 = smov [#allocation5]  }
  0x11   : > { %p4009_p8 = pnand %p2620_p5, %p274_p7  ;;  %s287_s26 = sshll.u32 %s3900_s25, 4  ;;  %s288_s26 = int_to_ptr.vmem [resolvable:$true] %s287_s26 }
  0x12   : > { %s4772_s4 = sld [smem:[#allocation23_spill]]  ;;  %s3901_s11 = smov 64  }
  0x13   : > { %p3629_p9 = pneg %p4009_p8  ;;  %s3902_s12 = smov 4  }
  0x14   : > { %s3903_s18 = smov [#allocation7]   ;;  %s4773_s7 = sld [smem:[#allocation24_spill]] }
  0x15   : > { %p4017_p10 = pnand %p3629_p9, %p49_p1  ;;  %s307_s21 = sshll.u32 %s3903_s18, 4  ;;  %s308_s21 = int_to_ptr.vmem [resolvable:$true] %s307_s21 }
  0x16   : > { %s285_s23 = sshll.u32 %s4769_s1, 4  ;;  %s3904_s29 = smov [#allocation8]   ;;  %s286_s23 = int_to_ptr.hbm [resolvable:$true] %s285_s23 }
  0x17   : > { %3632 = dma.hbm_to_vmem [thread:$0]  (!%p4017_p10), %s286_s23, 1024, %s288_s26, [#allocation6], %s3901_s11, %s3901_s11, %s3902_s12  }
  0x18   : > { %s305_s30 = sshll.u32 %s4772_s4, 4  ;;  %s327_s1 = sshll.u32 %s3904_s29, 4  ;;  %s306_s30 = int_to_ptr.hbm [resolvable:$true] %s305_s30  ;;  %s328_s1 = int_to_ptr.vmem [resolvable:$true] %s327_s1 }
  0x19   : > { %3635 = dma.hbm_to_vmem [thread:$0]  (!%p4017_p10), %s306_s30, 9216, %s308_s21, [#allocation6], %s3901_s11, %s3901_s11, %s3902_s12  }
  0x1a   : > { %s325_s28 = sshll.u32 %s4773_s7, 4  ;;  %s4033_s23 = sadd.s32 1, %s3898_s16   ;;  %s326_s28 = int_to_ptr.hbm [resolvable:$true] %s325_s28 }
  0x1b   : > { %3638 = dma.hbm_to_vmem [thread:$0]  (!%p4017_p10), %s326_s28, 9216, %s328_s1, [#allocation9], %s3901_s11, %s3901_s11, %s3902_s12  }
  0x1c   : > { %s32_s26 = ssub.s32 %s3898_s16, %s4033_s23  ;;  %s35_s18 = sadd.s32 1, %s3894_s15 }
  0x1d   : > { %p33_p12 = scmp.eq.s32.totalorder %s32_s26, 0  ;;  %p42_p13 = scmp.ne.s32.totalorder %s3894_s15, %s3890_s14 }
  0x1e   : > { %p43_p0 = scmp.eq.s32.totalorder %s3898_s16, 0  ;;  %p3650_p3 = scmp.lt.s32.totalorder %s3898_s16, 2 }
  0x1f   : > { %s4045_s22 = scalar_select %p33_p12, %s3894_s15, %s35_s18  }
  0x20   : > { %p44_p5 = por %p43_p0, %p42_p13  ;;  %p4049_p7 = por %p261_p2, %p42_p13 }
  0x21   : > { %4774 = sst [smem:[#allocation15_spill]] %s4045_s22  ;;  %s347_s21 = sand.u32 1, %s3894_s15  }
  0x22   : > { %s3435_s25 = sshll.u32 %s3898_s16, 6  ;;  %s2625_s27 = sshll.u32 %s347_s21, 6 }
  0x23   : > { %s356_s11 = scalar_lea.hbm %s4744_s0, %s3435_s25  ;;  %s351_s28 = scalar_lea.vmem [#allocation2], %s2625_s27 }
  0x24   : > { %s357_s12 = sshll.u32 %s356_s11, 4  ;;  %s359_s26 = sshll.u32 %s351_s28, 4  ;;  %s358_s12 = int_to_ptr.hbm [resolvable:$true] %s357_s12  ;;  %s360_s26 = int_to_ptr.vmem [resolvable:$true] %s359_s26 }
  0x25   : > { %p4060_p9 = pnand %p3650_p3, %p44_p5  ;;  %s348_s4 = scalar_lea.sflag [#allocation3], %s347_s21 }
  0x26   : > { %s3794_s7 = sshra.s32 %s358_s12, 4  ;;  %s3801_s29 = scalar_lea.hbm %s4744_s0, 128  ;;  %s3795_s7 = int_to_ptr.hbm [resolvable:$true] %s3794_s7 }
  0x27   : > { %s3796_s22 = scalar_lea.hbm %s3795_s7, 64  ;;  %p3798_p10 = pneg %p4060_p9 }
  0x28   : > { %p3797_p2 = scmp.ne.s32.totalorder %s3795_s7, %s3796_s22  ;;  %p3802_p0 = scmp.lt.s32.totalorder %s3795_s7, %s4744_s0 }
  0x29   : > { %p3803_p3 = scmp.lt.s32.totalorder %s3801_s29, %s3796_s22 }
  0x2a   : > { %p3799_p12 = pnand %p3798_p10, %p3797_p2 }
  0x2b   : > { %p3804_p5 = por %p3803_p3, %p3802_p0 }
  0x2c   : > { %p3800_p13 = pneg %p3799_p12 }
  0x2e   : > { %p3805_p11 = pnand %p3804_p5, %p3800_p13 }
  0x30   : > { %3808 = shalt.err (!%p3805_p11)
}
  0x31   : > { %s3905_s21 = smov 128   ;;  %s3906_s28 = smov 8  }
  0x32   : > { %3642 = dma.hbm_to_vmem [thread:$0]  (!%p4060_p9), %s358_s12, 1024, %s360_s26, %s348_s4, %s3905_s21, %s3905_s21, %s3906_s28  }
  0x33   : > { %371 = sbr.rel (%p4009_p8) target bundleno = 810 (0x32a), region = 60 }
  0x38   : > { %s4077_s25 = sand.u32 1, %s3890_s14  }
  0x39   : > { %s2629_s7 = sshll.u32 %s4077_s25, 6  ;;  %s374_s22 = scalar_lea.sflag [#allocation3], %s4077_s25 }
  0x3a   : > { %s4083_s27 = scalar_lea.vmem [#allocation2], %s2629_s7 }
  0x3b   : > { %3869 = dma.done.wait (%p3996_p4), %s374_s22, 1024  }
  0x3c   : > { %3871 = vsyncadd (%p3996_p4), %s374_s22, 4294966272 }
  0x3d   : > { %3873 = dma.done.wait (%p49_p1), [#allocation6], 10240  }
  0x3e   : > { %3875 = vsyncadd (%p49_p1), [#allocation6], 4294957056 }
  0x3f   : > { %3877 = dma.done.wait (%p49_p1), [#allocation9], 9216  }
  0x40   : > { %3879 = vsyncadd (%p49_p1), [#allocation9], 4294958080  ;;  %v3443_v0 = vld [vmem:[#allocation5 + $0x38] sm:$0xff]  ;;  %v3442_v1 = vld [vmem:[#allocation5 + $0x30] sm:$0xff]  ;;  %vm591_vm0 = vcmask 1040384   ;;  %v4755_v63 = vmov 0.0  }
  0x41   : > { %506 = vmatpush.bf16.msra.mxu0 %v3443_v0  ;;  %3589 = vmatpush.bf16.msra.mxu3 %v3443_v0  ;;  %v3441_v2 = vld [vmem:[#allocation5 + $0x28] sm:$0xff]  ;;  %v3440_v3 = vld [vmem:[#allocation5 + $0x20] sm:$0xff]  ;;  %v3439_v4 = vld [vmem:[#allocation5 + $0x18] sm:$0xff]  ;;  %vm3908_vm2 = vmmov 1   ;;  %vm1193_vm5 = vcmask 1046528   ;;  %s3844_s21 = scalar_lea.hbm %s4754_s10, 128 }
  0x42   : > { %v3475_v5 = vld [vmem:[#allocation7 + $0xf8] sm:$0xff]  ;;  %v3438_v6 = vld [vmem:[#allocation5 + $0x10] sm:$0xff]  ;;  %v3437_v10 = vld [vmem:[#allocation5 + $0x8] sm:$0xff] }
  0x43   : > { %859 = vmatpush.bf16.msra.mxu1 %v3475_v5  ;;  %v3474_v7 = vld [vmem:[#allocation7 + $0xf0] sm:$0xff]  ;;  %v3483_v8 = vld [vmem:[#allocation7 + $0x138] sm:$0xff]  ;;  %v3473_v11 = vld [vmem:[#allocation7 + $0xe8] sm:$0xff] }
  0x44   : > { %888 = vmatpush.bf16.msra.mxu2 %v3483_v8  ;;  %v3482_v9 = vld [vmem:[#allocation7 + $0x130] sm:$0xff]  ;;  %v3436_v12 = vld [vmem:[#allocation5] sm:$0xff]  ;;  %v3481_v14 = vld [vmem:[#allocation7 + $0x128] sm:$0xff] }
  0x45   : > { %507 = vmatpush.bf16.msra.mxu0 %v3442_v1  ;;  %3590 = vmatpush.bf16.msra.mxu3 %v3442_v1  ;;  %v430_v13 = vld [vmem:[%s4083_s27] sm:$0xff]  ;;  %v431_v15 = vld [vmem:[%s4083_s27 + $0x8] sm:$0xff]  ;;  %v3451_v18 = vld [vmem:[#allocation7 + $0x38] sm:$0xff] }
  0x46   : > { %v434_v16 = vld [vmem:[%s4083_s27 + $0x20] sm:$0xff]  ;;  %v435_v17 = vld [vmem:[%s4083_s27 + $0x28] sm:$0xff]  ;;  %v3491_v20 = vld [vmem:[#allocation7 + $0x178] sm:$0xff]  ;;  %v438_v21 = vpack.c.bf16 %v431_v15, %v430_v13 }
  0x47   : > { %860 = vmatpush.bf16.msra.mxu1 %v3474_v7  ;;  %v3472_v19 = vld [vmem:[#allocation7 + $0xe0] sm:$0xff]  ;;  %v440_v22 = vpack.c.bf16 %v435_v17, %v434_v16  ;;  %v3450_v24 = vld [vmem:[#allocation7 + $0x30] sm:$0xff]  ;;  %v3471_v25 = vld [vmem:[#allocation7 + $0xd8] sm:$0xff] }
  0x48   : > { %889 = vmatpush.bf16.msra.mxu2 %v3482_v9  ;;  %v3480_v23 = vld [vmem:[#allocation7 + $0x120] sm:$0xff]  ;;  %v3490_v26 = vld [vmem:[#allocation7 + $0x170] sm:$0xff]  ;;  %v3449_v27 = vld [vmem:[#allocation7 + $0x28] sm:$0xff] }
  0x49   : > { %508 = vmatpush.bf16.msra.mxu0 %v3441_v2  ;;  %3591 = vmatpush.bf16.msra.mxu3 %v3441_v2  ;;  %v3470_v28 = vld [vmem:[#allocation7 + $0xd0] sm:$0xff]  ;;  %v3448_v29 = vld [vmem:[#allocation7 + $0x20] sm:$0xff]  ;;  %v433_v31 = vld [vmem:[%s4083_s27 + $0x18] sm:$0xff] }
  0x4a   : > { %v432_v30 = vld [vmem:[%s4083_s27 + $0x10] sm:$0xff]  ;;  %v437_v33 = vld [vmem:[%s4083_s27 + $0x38] sm:$0xff]  ;;  %v3469_v38 = vld [vmem:[#allocation7 + $0xc8] sm:$0xff] }
  0x4b   : > { %861 = vmatpush.bf16.msra.mxu1 %v3473_v11  ;;  %v436_v32 = vld [vmem:[%s4083_s27 + $0x30] sm:$0xff]  ;;  %v3447_v34 = vld [vmem:[#allocation7 + $0x18] sm:$0xff]  ;;  %v439_v35 = vpack.c.bf16 %v433_v31, %v432_v30  ;;  %v3489_v40 = vld [vmem:[#allocation7 + $0x168] sm:$0xff]  ;;  %s4673_s27 = scalar_lea.vmem [#allocation10], %s2629_s7  ;;  %s3588_s7 = sshll.u32 %s3987_s17, 6 }
  0x4c   : > { %890 = vmatpush.bf16.msra.mxu2 %v3481_v14  ;;  %v441_v36 = vpack.c.bf16 %v437_v33, %v436_v32  ;;  %v3446_v37 = vld [vmem:[#allocation7 + $0x10] sm:$0xff]  ;;  %v3479_v39 = vld [vmem:[#allocation7 + $0x118] sm:$0xff]  ;;  %v3445_v41 = vld [vmem:[#allocation7 + $0x8] sm:$0xff]  ;;  %s2513_s24 = scalar_lea.hbm %s4754_s10, %s3588_s7  ;;  %s2514_s12 = sshll.u32 %s4673_s27, 4  ;;  %s2515_s12 = int_to_ptr.vmem [resolvable:$true] %s2514_s12 }
  0x4d   : > { %509 = vmatpush.bf16.msra.mxu0 %v3440_v3  ;;  %3592 = vmatpush.bf16.msra.mxu3 %v3440_v3  ;;  %v3468_v42 = vld [vmem:[#allocation7 + $0xc0] sm:$0xff]  ;;  %v3478_v43 = vld [vmem:[#allocation7 + $0x110] sm:$0xff]  ;;  %v3477_v46 = vld [vmem:[#allocation7 + $0x108] sm:$0xff]  ;;  %s2516_s26 = sshll.u32 %s2513_s24, 4  ;;  %s2502_s17 = scalar_lea.sflag [#allocation4], %s4077_s25  ;;  %s2517_s26 = int_to_ptr.hbm [resolvable:$true] %s2516_s26 }
  0x4e   : > { %v3488_v44 = vld [vmem:[#allocation7 + $0x160] sm:$0xff]  ;;  %v3487_v47 = vld [vmem:[#allocation7 + $0x158] sm:$0xff]  ;;  %v3486_v49 = vld [vmem:[#allocation7 + $0x150] sm:$0xff]  ;;  %s3838_s18 = sshra.s32 %s2517_s26, 4  ;;  %s3839_s18 = int_to_ptr.hbm [resolvable:$true] %s3838_s18 }
  0x4f   : > { %862 = vmatpush.bf16.msra.mxu1 %v3472_v19  ;;  %v3444_v45 = vld [vmem:[#allocation7] sm:$0xff]  ;;  %v3459_v50 = vld [vmem:[#allocation7 + $0x78] sm:$0xff]  ;;  %v3485_v51 = vld [vmem:[#allocation7 + $0x148] sm:$0xff]  ;;  %s3840_s29 = scalar_lea.hbm %s3839_s18, 64  ;;  %p3845_p11 = scmp.lt.s32.totalorder %s3839_s18, %s4754_s10 }
  0x50   : > { %891 = vmatpush.bf16.msra.mxu2 %v3480_v23  ;;  %v3476_v48 = vld [vmem:[#allocation7 + $0x100] sm:$0xff]  ;;  %v3458_v53 = vld [vmem:[#allocation7 + $0x70] sm:$0xff]  ;;  %v3457_v55 = vld [vmem:[#allocation7 + $0x68] sm:$0xff]  ;;  %p3841_p1 = scmp.ne.s32.totalorder %s3839_s18, %s3840_s29  ;;  %p3846_p9 = scmp.lt.s32.totalorder %s3844_s21, %s3840_s29 }
  0x51   : > { %510 = vmatpush.bf16.msra.mxu0 %v3439_v4  ;;  %3593 = vmatpush.bf16.msra.mxu3 %v3439_v4  ;;  %v3484_v52 = vld [vmem:[#allocation7 + $0x140] sm:$0xff]  ;;  %vm4119_vm1 = vmneg %vm591_vm0  ;;  %v3507_v7 = vld [vmem:[#allocation7 + $0x1f8] sm:$0xff] }
  0x52   : > { %v4108_v54 = vld [vmem:[%s4746_s2] ss:$0 sm:$0xff]  ;;  %vm4129_vm3 = vmpackc.low %vm4119_vm1, %vm3908_vm2  ;;  %v3506_v9 = vld [vmem:[#allocation7 + $0x1f0] sm:$0xff]  ;;  %p3842_p4 = pnand %p3841_p1, %p4049_p7  ;;  %p3847_p2 = por %p3846_p9, %p3845_p11 }
  0x53   : > { %863 = vmatpush.bf16.msra.mxu1 %v3471_v25  ;;  %v4113_v56 = vld [vmem:[%s4747_s3] ss:$0 sm:$0xff]  ;;  %v3467_v13 = vld [vmem:[#allocation7 + $0xb8] sm:$0xff]  ;;  %v3454_v15 = vld [vmem:[#allocation7 + $0x50] sm:$0xff] }
  0x54   : > { %892 = vmatpush.bf16.msra.mxu2 %v3479_v39  ;;  %v3456_v59 = vld [vmem:[#allocation7 + $0x60] sm:$0xff]  ;;  %v3505_v16 = vld [vmem:[#allocation7 + $0x1e8] sm:$0xff]  ;;  %vm4155_vm4 = vmpackc.low %vm4119_vm1, %vm4119_vm1  ;;  %p3843_p8 = pneg %p3842_p4 }
  0x55   : > { %511 = vmatpush.bf16.msra.mxu0 %v3438_v6  ;;  %3594 = vmatpush.bf16.msra.mxu3 %v3438_v6  ;;  %v3455_v6 = vld [vmem:[#allocation7 + $0x58] sm:$0xff]  ;;  %v3453_v32 = vld [vmem:[#allocation7 + $0x48] sm:$0xff]  ;;  %vm4222_vm6 = vmpackc.low %vm1193_vm5, %vm1193_vm5 }
  0x56   : > { %v3503_v33 = vld [vmem:[#allocation7 + $0x1d8] sm:$0xff]  ;;  %vm4236_vm7 = vmpackc.low %vm1193_vm5, %vm3908_vm2  ;;  %p3848_p10 = pnand %p3847_p2, %p3843_p8 }
  0x57   : > { %864 = vmatpush.bf16.msra.mxu1 %v3470_v28  ;;  %v3499_v28 = vld [vmem:[#allocation7 + $0x1b8] sm:$0xff]  ;;  %vm4279_vm8 = vmpackc.low %vm3908_vm2, %vm4119_vm1 }
  0x58   : > { %893 = vmatpush.bf16.msra.mxu2 %v3478_v43  ;;  %v3497_v43 = vld [vmem:[#allocation7 + $0x1a8] sm:$0xff]  ;;  %vm4321_vm9 = vmpackc.low %vm3908_vm2, %vm1193_vm5 }
  0x59   : > { %512 = vmatpush.bf16.msra.mxu0 %v3437_v10  ;;  %3595 = vmatpush.bf16.msra.mxu3 %v3437_v10 }
  0x5b   : > { %865 = vmatpush.bf16.msra.mxu1 %v3469_v38  ;;  %v3502_v38 = vld [vmem:[#allocation7 + $0x1d0] sm:$0xff] }
  0x5c   : > { %894 = vmatpush.bf16.msra.mxu2 %v3477_v46  ;;  %v3501_v46 = vld [vmem:[#allocation7 + $0x1c8] sm:$0xff] }
  0x5d   : > { %513 = vmatpush.bf16.msra.mxu0 %v3436_v12  ;;  %3596 = vmatpush.bf16.msra.mxu3 %v3436_v12 }
  0x5f   : > { %866 = vmatpush.bf16.msra.mxu1 %v3468_v42  ;;  %v3463_v42 = vld [vmem:[#allocation7 + $0x98] sm:$0xff] }
  0x60   : > { %514 = vmatmul.bf16.vlgmr.msra.gmra.mxu0 %v438_v21  ;;  %524 = vmatmul.bf16.vlgmr.msra.gmra.mxu3 %v440_v22 }
  0x61   : > { %1090 = vmatpush.bf16.msrb.mxu0 %v3451_v18  ;;  %917 = vmatpush.bf16.msrb.mxu3 %v3491_v20  ;;  %v3466_v18 = vld [vmem:[#allocation7 + $0xb0] sm:$0xff]  ;;  %v3504_v20 = vld [vmem:[#allocation7 + $0x1e0] sm:$0xff] }
  0x62   : > { %895 = vmatpush.bf16.msra.mxu2 %v3476_v48  ;;  %v3496_v48 = vld [vmem:[#allocation7 + $0x1a0] sm:$0xff] }
  0x63   : > { %1119 = vmatpush.bf16.msrb.mxu1 %v3459_v50  ;;  %v3500_v50 = vld [vmem:[#allocation7 + $0x1c0] sm:$0xff] }
  0x65   : > { %1091 = vmatpush.bf16.msrb.mxu0 %v3450_v24  ;;  %918 = vmatpush.bf16.msrb.mxu3 %v3490_v26 }
  0x66   : > { %1148 = vmatpush.bf16.msrb.mxu2 %v3467_v13  ;;  %v3514_v13 = vld [vmem:[#allocation7 + $0x230] sm:$0xff] }
  0x67   : > { %1120 = vmatpush.bf16.msrb.mxu1 %v3458_v53 }
  0x69   : > { %1092 = vmatpush.bf16.msrb.mxu0 %v3449_v27  ;;  %919 = vmatpush.bf16.msrb.mxu3 %v3489_v40  ;;  %v3465_v27 = vld [vmem:[#allocation7 + $0xa8] sm:$0xff] }
  0x6a   : > { %1149 = vmatpush.bf16.msrb.mxu2 %v3466_v18 }
  0x6b   : > { %1121 = vmatpush.bf16.msrb.mxu1 %v3457_v55 }
  0x6d   : > { %1093 = vmatpush.bf16.msrb.mxu0 %v3448_v29  ;;  %920 = vmatpush.bf16.msrb.mxu3 %v3488_v44 }
  0x6e   : > { %1150 = vmatpush.bf16.msrb.mxu2 %v3465_v27  ;;  %v3512_v27 = vld [vmem:[#allocation7 + $0x220] sm:$0xff] }
  0x6f   : > { %1122 = vmatpush.bf16.msrb.mxu1 %v3456_v59  ;;  %v3495_v59 = vld [vmem:[#allocation7 + $0x198] sm:$0xff] }
  0x70   : > { %519 = vmatmul.bf16.gmra.mxu0 %v439_v35  ;;  %529 = vmatmul.bf16.gmra.mxu3 %v441_v36  ;;  %v3464_v35 = vld [vmem:[#allocation7 + $0xa0] sm:$0xff]  ;;  %v3498_v36 = vld [vmem:[#allocation7 + $0x1b0] sm:$0xff] }
  0x71   : > { %1094 = vmatpush.bf16.msrb.mxu0 %v3447_v34  ;;  %921 = vmatpush.bf16.msrb.mxu3 %v3487_v47  ;;  %v3462_v47 = vld [vmem:[#allocation7 + $0x90] sm:$0xff] }
  0x72   : > { %1151 = vmatpush.bf16.msrb.mxu2 %v3464_v35  ;;  %v4788_v35 = vmov 0 }
  0x73   : > { %1123 = vmatpush.bf16.msrb.mxu1 %v3455_v6  ;;  %v3494_v6 = vld [vmem:[#allocation7 + $0x190] sm:$0xff]  ;;  %v4789_v35 = vsel %vm4236_vm7, 4294967295, %v4788_v35 }
  0x74   : > { %4790 = vst [vmem:[#allocation19_spill] sm:$0xff] %v4789_v35  ;;  %v3556_v35 = vld [vmem:[#allocation8 + $0x140] sm:$0xff] }
  0x75   : > { %1095 = vmatpush.bf16.msrb.mxu0 %v3446_v37  ;;  %922 = vmatpush.bf16.msrb.mxu3 %v3486_v49 }
  0x76   : > { %1152 = vmatpush.bf16.msrb.mxu2 %v3463_v42 }
  0x77   : > { %1124 = vmatpush.bf16.msrb.mxu1 %v3454_v15 }
  0x79   : > { %1096 = vmatpush.bf16.msrb.mxu0 %v3445_v41  ;;  %923 = vmatpush.bf16.msrb.mxu3 %v3485_v51 }
  0x7a   : > { %1153 = vmatpush.bf16.msrb.mxu2 %v3462_v47 }
  0x7b   : > { %1125 = vmatpush.bf16.msrb.mxu1 %v3453_v32  ;;  %v4785_v32 = vmov 0 }
  0x7c   : > { %v4786_v32 = vsel %vm4222_vm6, 4294967295, %v4785_v32 }
  0x7d   : > { %1097 = vmatpush.bf16.msrb.mxu0 %v3444_v45  ;;  %924 = vmatpush.bf16.msrb.mxu3 %v3484_v52  ;;  %v3452_v45 = vld [vmem:[#allocation7 + $0x40] sm:$0xff]  ;;  %4787 = vst [vmem:[#allocation18_spill] sm:$0xff] %v4786_v32 }
  0x7f   : > { %1126 = vmatpush.bf16.msrb.mxu1 %v3452_v45 }
  0x81   : > { %1433 = vmatpush.bf16.msra.mxu0 %v3507_v7  ;;  %1404 = vmatpush.bf16.msra.mxu3 %v3499_v28 }
  0x85   : > { %1434 = vmatpush.bf16.msra.mxu0 %v3506_v9  ;;  %1405 = vmatpush.bf16.msra.mxu3 %v3498_v36 }
  0x89   : > { %1435 = vmatpush.bf16.msra.mxu0 %v3505_v16  ;;  %1406 = vmatpush.bf16.msra.mxu3 %v3497_v43 }
  0x8d   : > { %1436 = vmatpush.bf16.msra.mxu0 %v3504_v20  ;;  %1407 = vmatpush.bf16.msra.mxu3 %v3496_v48 }
  0x91   : > { %1437 = vmatpush.bf16.msra.mxu0 %v3503_v33  ;;  %1408 = vmatpush.bf16.msra.mxu3 %v3495_v59 }
  0x95   : > { %1438 = vmatpush.bf16.msra.mxu0 %v3502_v38  ;;  %1409 = vmatpush.bf16.msra.mxu3 %v3494_v6 }
  0x99   : > { %1439 = vmatpush.bf16.msra.mxu0 %v3501_v46 }
  0x9d   : > { %1440 = vmatpush.bf16.msra.mxu0 %v3500_v50 }
  0xdd   : > { %v515_v57 = vpop.f32.mrf.mxu0 }
  0xde   : > { %v539_v58 = vmul.f32 %v4108_v54, %v515_v57 }
  0xe0   : > { %v551_v60 = vadd.f32 %v4113_v56, %v539_v58  ;;  %v3461_v58 = vld [vmem:[#allocation7 + $0x88] sm:$0xff] }
  0xe1   : > { %1154 = vmatpush.bf16.msrb.mxu2 %v3461_v58 }
  0xe2   : > { %v4117_v61 = vmax.f32 %v551_v60, 0.0 }
  0xe3   : > { %v525_v17 = vpop.f32.mrf.mxu3 }
  0xe4   : > { %v657_v0 = vpack.c.bf16 %v4117_v61, %v4755_v63  ;;  %v575_v1 = vrot.slane %v4117_v61, 7  ;;  %v543_v29 = vmul.f32 %v4108_v54, %v525_v17 }
  0xe5   : > { %v517_v2 = vpop.f32.mrf.mxu0 }
  0xe6   : > { %v540_v4 = vmul.f32 %v4108_v54, %v517_v2  ;;  %867 = vmatmul.bf16.vlgmr.msra.gmra.mxu1 %v657_v0  ;;  %v2860_v5 = vpack.c.bf16 %v575_v1, %v4755_v63  ;;  %v555_v39 = vadd.f32 %v4113_v56, %v543_v29  ;;  %v3515_v2 = vld [vmem:[#allocation7 + $0x238] sm:$0xff] }
  0xe7   : > { %1462 = vmatpush.bf16.msra.mxu1 %v3515_v2 }
  0xe8   : > { %v552_v8 = vadd.f32 %v4113_v56, %v540_v4  ;;  %2861 = vmatmul.msk.bf16.vlgmr.msrb.gmra.mxu0 %vm4129_vm3, %v2860_v5  ;;  %v4176_v44 = vmax.f32 %v555_v39, 0.0  ;;  %v3460_v5 = vld [vmem:[#allocation7 + $0x80] sm:$0xff]  ;;  %v3509_v39 = vld [vmem:[#allocation7 + $0x208] sm:$0xff] }
  0xe9   : > { %1155 = vmatpush.bf16.msrb.mxu2 %v3460_v5 }
  0xea   : > { %v4140_v10 = vmax.f32 %v552_v8, 0.0  ;;  %v579_v52 = vrot.slane %v4176_v44, 7  ;;  %v1181_v45 = vrot.slane %v4176_v44, 1 }
  0xeb   : > { %v527_v37 = vpop.f32.mrf.mxu3  ;;  %1463 = vmatpush.bf16.msra.mxu1 %v3514_v13  ;;  %v3547_v13 = vld [vmem:[#allocation8 + $0xf8] sm:$0xff] }
  0xec   : > { %v658_v11 = vpack.c.bf16 %v4140_v10, %v4117_v61  ;;  %v576_v23 = vrot.slane %v4140_v10, 7  ;;  %v544_v49 = vmul.f32 %v4108_v54, %v527_v37 }
  0xed   : > { %v520_v12 = vpop.f32.mrf.mxu0 }
  0xee   : > { %v541_v14 = vmul.f32 %v4108_v54, %v520_v12  ;;  %896 = vmatmul.bf16.vlgmr.msra.gmra.mxu2 %v658_v11  ;;  %v556_v55 = vadd.f32 %v4113_v56, %v544_v49  ;;  %v3493_v11 = vld [vmem:[#allocation7 + $0x188] sm:$0xff]  ;;  %v2880_v29 = vpack.c.bf16 %v576_v23, %v575_v1  ;;  %v3510_v1 = vld [vmem:[#allocation7 + $0x210] sm:$0xff] }
  0xef   : > { %1410 = vmatpush.bf16.msra.mxu3 %v3493_v11  ;;  %1822 = vmatpush.bf16.msra.mxu2 %v3547_v13 }
  0xf0   : > { %v553_v19 = vadd.f32 %v4113_v56, %v541_v14  ;;  %v4191_v4 = vmax.f32 %v556_v55, 0.0  ;;  %v3492_v14 = vld [vmem:[#allocation7 + $0x180] sm:$0xff] }
  0xf2   : > { %v4146_v21 = vmax.f32 %v553_v19, 0.0  ;;  %v662_v8 = vpack.c.bf16 %v4191_v4, %v4176_v44  ;;  %v580_v16 = vrot.slane %v4191_v4, 7 }
  0xf3   : > { %v530_v53 = vpop.f32.mrf.mxu3  ;;  %1411 = vmatpush.bf16.msra.mxu3 %v3492_v14 }
  0xf4   : > { %v659_v22 = vpack.c.bf16 %v4146_v21, %v4140_v10  ;;  %v577_v24 = vrot.slane %v4146_v21, 7  ;;  %v545_v60 = vmul.f32 %v4108_v54, %v530_v53  ;;  %v1179_v38 = vrot.slane %v4146_v21, 1 }
  0xf5   : > { %v522_v26 = vpop.f32.mrf.mxu0  ;;  %v2890_v42 = vpack.c.bf16 %v580_v16, %v579_v52  ;;  %v4791_v53 = vmov 0 }
  0xf6   : > { %v542_v30 = vmul.f32 %v4108_v54, %v522_v26  ;;  %872 = vmatmul.bf16.gmra.mxu1 %v659_v22  ;;  %925 = vmatmul.bf16.vlgmr.msrb.gmra.mxu3 %v659_v22  ;;  %v4165_v31 = vpack.c.bf16 %v577_v24, %v576_v23  ;;  %v557_v7 = vadd.f32 %v4113_v56, %v545_v60  ;;  %v3513_v22 = vld [vmem:[#allocation7 + $0x228] sm:$0xff]  ;;  %v4792_v53 = vsel %vm4279_vm8, 4294967295, %v4791_v53 }
  0xf7   : > { %1464 = vmatpush.bf16.msra.mxu1 %v3513_v22  ;;  %4793 = vst [vmem:[#allocation20_spill] sm:$0xff] %v4792_v53  ;;  %v3558_v53 = vld [vmem:[#allocation8 + $0x150] sm:$0xff] }
  0xf8   : > { %v554_v34 = vadd.f32 %v4113_v56, %v542_v30  ;;  %2866 = vmatmul.msk.bf16.gmra.mxu0 %vm4155_vm4, %v4165_v31  ;;  %v4199_v12 = vmax.f32 %v557_v7, 0.0  ;;  %v1177_v30 = vrot.slane %v4117_v61, 1 }
  0xfa   : > { %v4172_v40 = vmax.f32 %v554_v34, 0.0  ;;  %4783 = vst [vmem:[#allocation16_spill] sm:$0xff] %v4199_v12  ;;  %v581_v17 = vrot.slane %v4199_v12, 7  ;;  %v663_v19 = vpack.c.bf16 %v4199_v12, %v4191_v4  ;;  %v3511_v34 = vld [vmem:[#allocation7 + $0x218] sm:$0xff]  ;;  %v3013_v37 = vpack.c.bf16 %v1177_v30, %v4755_v63 }
  0xfb   : > { %v532_v9 = vpop.f32.mrf.mxu3  ;;  %1465 = vmatpush.bf16.msra.mxu1 %v3512_v27 }
  0xfc   : > { %v660_v41 = vpack.c.bf16 %v4172_v40, %v4146_v21  ;;  %v578_v51 = vrot.slane %v4172_v40, 7  ;;  %v661_v57 = vpack.c.bf16 %v4176_v44, %v4172_v40  ;;  %v546_v15 = vmul.f32 %v4108_v54, %v532_v9 }
  0xfd   : > { %v2875_v20 = vpack.c.bf16 %v581_v17, %v580_v16  ;;  %v1180_v23 = vrot.slane %v4172_v40, 1 }
  0xfe   : > { %901 = vmatmul.bf16.gmra.mxu2 %v660_v41  ;;  %v4189_v0 = vpack.c.bf16 %v579_v52, %v578_v51  ;;  %v558_v18 = vadd.f32 %v4113_v56, %v546_v15  ;;  %v1178_v56 = vrot.slane %v4140_v10, 1  ;;  %v2885_v36 = vpack.c.bf16 %v578_v51, %v577_v24  ;;  %v3508_v24 = vld [vmem:[#allocation7 + $0x200] sm:$0xff] }
  0xff   : > { %1466 = vmatpush.bf16.msra.mxu1 %v3511_v34  ;;  %v1182_v41 = vrot.slane %v4191_v4, 1  ;;  %v3019_v50 = vpack.c.bf16 %v1181_v45, %v1180_v23  ;;  %v1183_v51 = vrot.slane %v4199_v12, 1  ;;  %v4794_v15 = vmov 0 }
 0x100   : > { %v4207_v26 = vmax.f32 %v558_v18, 0.0  ;;  %v3025_v33 = vpack.c.bf16 %v1178_v56, %v1177_v30  ;;  %v3016_v43 = vpack.c.bf16 %v1179_v38, %v1178_v56  ;;  %v4795_v15 = vsel %vm4321_vm9, 4294967295, %v4794_v15  ;;  %v3546_v18 = vld [vmem:[#allocation8 + $0xf0] sm:$0xff]  ;;  %v3544_v30 = vld [vmem:[#allocation8 + $0xe0] sm:$0xff] }
 0x101   : > { %v3031_v46 = vpack.c.bf16 %v1182_v41, %v1181_v45  ;;  %v3022_v58 = vpack.c.bf16 %v1183_v51, %v1182_v41  ;;  %4796 = vst [vmem:[#allocation21_spill] sm:$0xff] %v4795_v15  ;;  %1823 = vmatpush.bf16.msra.mxu2 %v3546_v18  ;;  %v3563_v41 = vld [vmem:[#allocation8 + $0x178] sm:$0xff]  ;;  %v3542_v45 = vld [vmem:[#allocation8 + $0xd0] sm:$0xff]  ;;  %v3548_v15 = vld [vmem:[#allocation8 + $0x100] sm:$0xff] }
 0x102   : > { %4784 = vst [vmem:[#allocation17_spill] sm:$0xff] %v4207_v26  ;;  %v664_v54 = vpack.c.bf16 %v4207_v26, %v4199_v12  ;;  %v665_v28 = vpack.c.bf16 0.0, %v4207_v26  ;;  %v582_v47 = vrot.slane %v4207_v26, 7  ;;  %v1184_v48 = vrot.slane %v4207_v26, 1  ;;  %1880 = vmatpush.bf16.msrb.mxu0 %v3563_v41  ;;  %v3551_v41 = vld [vmem:[#allocation8 + $0x118] sm:$0xff] }
 0x103   : > { %1467 = vmatpush.bf16.msra.mxu1 %v3510_v1 }
 0x104   : > { %v2895_v49 = vpack.c.bf16 %v582_v47, %v581_v17  ;;  %v3034_v52 = vpack.c.bf16 %v1184_v48, %v1183_v51  ;;  %v2914_v55 = vpack.c.bf16 0.0, %v582_v47  ;;  %v3046_v16 = vpack.c.bf16 0.0, %v1184_v48  ;;  %v3521_v47 = vld [vmem:[#allocation8 + $0x28] sm:$0xff]  ;;  %v3520_v51 = vld [vmem:[#allocation8 + $0x20] sm:$0xff] }
 0x106   : > { %877 = vmatmul.bf16.gmra.mxu1 %v661_v57  ;;  %930 = vmatmul.bf16.gmra.mxu3 %v661_v57 }
 0x107   : > { %1468 = vmatpush.bf16.msra.mxu1 %v3509_v39 }
 0x108   : > { %2871 = vmatmul.msk.bf16.gmra.mxu0 %vm4155_vm4, %v4189_v0 }
 0x10b   : > { %1469 = vmatpush.bf16.msra.mxu1 %v3508_v24 }
 0x10e   : > { %906 = vmatmul.bf16.gmra.mxu2 %v662_v8 }
 0x116   : > { %882 = vmatmul.bf16.gmra.mxu1 %v663_v19  ;;  %935 = vmatmul.bf16.gmra.mxu3 %v663_v19 }
 0x118   : > { %2876 = vmatmul.msk.bf16.gmra.mxu0 %vm4155_vm4, %v2875_v20 }
 0x11e   : > { %911 = vmatmul.bf16.gmra.mxu2 %v664_v54  ;;  %v3545_v54 = vld [vmem:[#allocation8 + $0xe8] sm:$0xff] }
 0x11f   : > { %1824 = vmatpush.bf16.msra.mxu2 %v3545_v54  ;;  %v3552_v54 = vld [vmem:[#allocation8 + $0x120] sm:$0xff] }
 0x123   : > { %1825 = vmatpush.bf16.msra.mxu2 %v3544_v30  ;;  %v3518_v30 = vld [vmem:[#allocation8 + $0x10] sm:$0xff] }
 0x126   : > { %940 = vmatmul.bf16.gmra.mxu3 %v665_v28  ;;  %2881 = vmatmul.msk.bf16.vlgmr.msrb.gmra.mxu1 %vm4155_vm4, %v2880_v29 }
 0x128   : > { %3026 = vmatmul.msk.bf16.vlgmr.msra.gmra.mxu0 %vm4222_vm6, %v3025_v33 }
 0x12e   : > { %2901 = vmatmul.msk.bf16.vlgmr.msrb.gmra.mxu2 %vm4155_vm4, %v4165_v31  ;;  %v3028_v31 = vpack.c.bf16 %v1180_v23, %v1179_v38  ;;  %v3523_v38 = vld [vmem:[#allocation8 + $0x38] sm:$0xff] }
 0x12f   : > { %2053 = vmatpush.bf16.msrb.mxu1 %v3523_v38  ;;  %v3561_v38 = vld [vmem:[#allocation8 + $0x168] sm:$0xff] }
 0x136   : > { %2886 = vmatmul.msk.bf16.gmra.mxu1 %vm4155_vm4, %v2885_v36  ;;  %3014 = vmatmul.msk.bf16.vlgmr.msra.gmra.mxu3 %vm4236_vm7, %v3013_v37  ;;  %v3543_v36 = vld [vmem:[#allocation8 + $0xd8] sm:$0xff] }
 0x137   : > { %v3555_v37 = vld [vmem:[#allocation8 + $0x138] sm:$0xff]  ;;  %1826 = vmatpush.bf16.msra.mxu2 %v3543_v36 }
 0x138   : > { %3029 = vmatmul.msk.bf16.gmra.mxu0 %vm4222_vm6, %v3028_v31  ;;  %1851 = vmatpush.bf16.msrb.mxu3 %v3555_v37 }
 0x13b   : > { %1827 = vmatpush.bf16.msra.mxu2 %v3542_v45  ;;  %v3517_v45 = vld [vmem:[#allocation8 + $0x8] sm:$0xff] }
 0x13e   : > { %2906 = vmatmul.msk.bf16.gmra.mxu2 %vm4155_vm4, %v4189_v0 }
 0x146   : > { %2891 = vmatmul.msk.bf16.gmra.mxu1 %vm4155_vm4, %v2890_v42  ;;  %3017 = vmatmul.msk.bf16.gmra.mxu3 %vm4222_vm6, %v3016_v43 }
 0x148   : > { %3032 = vmatmul.msk.bf16.gmra.mxu0 %vm4222_vm6, %v3031_v46  ;;  %v3554_v46 = vld [vmem:[#allocation8 + $0x130] sm:$0xff] }
 0x149   : > { %1852 = vmatpush.bf16.msrb.mxu3 %v3554_v46 }
 0x14e   : > { %2911 = vmatmul.msk.bf16.gmra.mxu2 %vm4155_vm4, %v2875_v20 }
 0x156   : > { %2896 = vmatmul.msk.bf16.gmra.mxu1 %vm4155_vm4, %v2895_v49  ;;  %3020 = vmatmul.msk.bf16.gmra.mxu3 %vm4222_vm6, %v3019_v50  ;;  %v3562_v49 = vld [vmem:[#allocation8 + $0x170] sm:$0xff] }
 0x157   : > { %1881 = vmatpush.bf16.msrb.mxu0 %v3562_v49  ;;  %v3560_v49 = vld [vmem:[#allocation8 + $0x160] sm:$0xff] }
 0x158   : > { %3035 = vmatmul.msk.bf16.gmra.mxu0 %vm4222_vm6, %v3034_v52  ;;  %v3541_v52 = vld [vmem:[#allocation8 + $0xc8] sm:$0xff] }
 0x159   : > { %1828 = vmatpush.bf16.msra.mxu2 %v3541_v52  ;;  %v3516_v52 = vld [vmem:[#allocation8] sm:$0xff] }
 0x15b   : > { %1882 = vmatpush.bf16.msrb.mxu0 %v3561_v38 }
 0x15e   : > { %2915 = vmatmul.msk.bf16.gmra.mxu2 %vm4279_vm8, %v2914_v55  ;;  %v3553_v55 = vld [vmem:[#allocation8 + $0x128] sm:$0xff] }
 0x15f   : > { %1853 = vmatpush.bf16.msrb.mxu3 %v3553_v55  ;;  %1883 = vmatpush.bf16.msrb.mxu0 %v3560_v49  ;;  %v3549_v55 = vld [vmem:[#allocation8 + $0x108] sm:$0xff] }
 0x163   : > { %v4285_v57 = vpop.f32.mrf.mxu1  ;;  %1854 = vmatpush.bf16.msrb.mxu3 %v3552_v54 }
 0x165   : > { %v4301_v2 = vpop.f32.mrf.mxu0 }
 0x166   : > { %3023 = vmatmul.msk.bf16.gmra.mxu3 %vm4222_vm6, %v3022_v58  ;;  %3038 = vmatmul.msk.bf16.vlgmr.msra.gmra.mxu1 %vm4222_vm6, %v3016_v43  ;;  %v3522_v43 = vld [vmem:[#allocation8 + $0x30] sm:$0xff] }
 0x167   : > { %2054 = vmatpush.bf16.msrb.mxu1 %v3522_v43  ;;  %1855 = vmatpush.bf16.msrb.mxu3 %v3551_v41  ;;  %v3531_v41 = vld [vmem:[#allocation8 + $0x78] sm:$0xff] }
 0x16b   : > { %v4291_v59 = vpop.f32.mrf.mxu1  ;;  %2055 = vmatpush.bf16.msrb.mxu1 %v3521_v47  ;;  %v3540_v47 = vld [vmem:[#allocation8 + $0xc0] sm:$0xff] }
 0x16c   : > { %1829 = vmatpush.bf16.msra.mxu2 %v3540_v47 }
 0x16d   : > { %v4313_v9 = vpop.f32.mrf.mxu0 }
 0x16f   : > { %2056 = vmatpush.bf16.msrb.mxu1 %v3520_v51  ;;  %v3550_v51 = vld [vmem:[#allocation8 + $0x110] sm:$0xff] }
 0x170   : > { %1856 = vmatpush.bf16.msrb.mxu3 %v3550_v51  ;;  %2082 = vmatpush.bf16.msrb.mxu2 %v3531_v41 }
 0x171   : > { %v4303_v5 = vpop.f32.mrf.mxu2 }
 0x172   : > { %v898_v47 = vadd.f32 %v4303_v5, %v4285_v57 }
 0x173   : > { %v4293_v62 = vpop.f32.mrf.mxu1 }
 0x174   : > { %1857 = vmatpush.bf16.msrb.mxu3 %v3549_v55  ;;  %v3530_v55 = vld [vmem:[#allocation8 + $0x70] sm:$0xff] }
 0x175   : > { %v4327_v19 = vpop.f32.mrf.mxu0  ;;  %2083 = vmatpush.bf16.msrb.mxu2 %v3530_v55 }
 0x176   : > { %3041 = vmatmul.msk.bf16.gmra.mxu1 %vm4222_vm6, %v3019_v50 }
 0x178   : > { %1858 = vmatpush.bf16.msrb.mxu3 %v3548_v15 }
 0x179   : > { %v4299_v0 = vpop.f32.mrf.mxu3  ;;  %v4315_v11 = vpop.f32.mrf.mxu2 }
 0x17b   : > { %v4297_v60 = vpop.f32.mrf.mxu1 }
 0x17d   : > { %v4337_v56 = vpop.f32.mrf.mxu0 }
 0x181   : > { %v4309_v7 = vpop.f32.mrf.mxu3  ;;  %v4331_v20 = vpop.f32.mrf.mxu2 }
 0x183   : > { %v4305_v6 = vpop.f32.mrf.mxu1 }
 0x185   : > { %v4345_v34 = vpop.f32.mrf.mxu0 }
 0x186   : > { %3044 = vmatmul.msk.bf16.gmra.mxu1 %vm4222_vm6, %v3022_v58 }
 0x189   : > { %v4325_v17 = vpop.f32.mrf.mxu3  ;;  %v4339_v28 = vpop.f32.mrf.mxu2 }
 0x18b   : > { %v4311_v8 = vpop.f32.mrf.mxu1 }
 0x18d   : > { %v4355_v24 = vpop.f32.mrf.mxu0 }
 0x191   : > { %v4335_v27 = vpop.f32.mrf.mxu3  ;;  %v4347_v1 = vpop.f32.mrf.mxu2 }
 0x193   : > { %v4317_v14 = vpop.f32.mrf.mxu1 }
 0x195   : > { %v4363_v58 = vpop.f32.mrf.mxu0 }
 0x196   : > { %3047 = vmatmul.msk.bf16.gmra.mxu1 %vm4321_vm9, %v3046_v16  ;;  %v3519_v16 = vld [vmem:[#allocation8 + $0x18] sm:$0xff] }
 0x197   : > { %2057 = vmatpush.bf16.msrb.mxu1 %v3519_v16  ;;  %v3559_v16 = vld [vmem:[#allocation8 + $0x158] sm:$0xff] }
 0x198   : > { %1884 = vmatpush.bf16.msrb.mxu0 %v3559_v16 }
 0x199   : > { %v4343_v33 = vpop.f32.mrf.mxu3  ;;  %v4357_v42 = vpop.f32.mrf.mxu2 }
 0x19b   : > { %v4333_v22 = vpop.f32.mrf.mxu1  ;;  %2058 = vmatpush.bf16.msrb.mxu1 %v3518_v30 }
 0x19c   : > { %1885 = vmatpush.bf16.msrb.mxu0 %v3558_v53  ;;  %v900_v53 = vadd.f32 %v4315_v11, %v4291_v59  ;;  %v4397_v59 = vld [vmem:[%s4750_s6] ss:$0 sm:$0xff] }
 0x19d   : > { %v4371_v37 = vpop.f32.mrf.mxu0 }
 0x19e   : > { %v929_v41 = vadd.f32 %v4309_v7, %v900_v53  ;;  %v903_v7 = vadd.f32 %v4331_v20, %v4293_v62 }
 0x19f   : > { %2059 = vmatpush.bf16.msrb.mxu1 %v3517_v45  ;;  %v3557_v45 = vld [vmem:[#allocation8 + $0x148] sm:$0xff] }
 0x1a0   : > { %1886 = vmatpush.bf16.msrb.mxu0 %v3557_v45  ;;  %v932_v55 = vadd.f32 %v4325_v17, %v903_v7  ;;  %v905_v17 = vadd.f32 %v4339_v28, %v4297_v60  ;;  %v3539_v60 = vld [vmem:[#allocation8 + $0xb8] sm:$0xff] }
 0x1a1   : > { %v4351_v31 = vpop.f32.mrf.mxu3  ;;  %v4365_v13 = vpop.f32.mrf.mxu2  ;;  %2111 = vmatpush.bf16.msra.mxu3 %v3539_v60 }
 0x1a2   : > { %v934_v7 = vadd.f32 %v4335_v27, %v905_v17 }
 0x1a3   : > { %v4341_v29 = vpop.f32.mrf.mxu1  ;;  %2060 = vmatpush.bf16.msrb.mxu1 %v3516_v52  ;;  %v927_v52 = vadd.f32 %v4299_v0, %v898_v47  ;;  %v4392_v0 = vld [vmem:[%s4749_s5] ss:$0 sm:$0xff] }
 0x1a4   : > { %1887 = vmatpush.bf16.msrb.mxu0 %v3556_v35 }
 0x1a5   : > { %v1442_v30 = vpop.f32.mrf.mxu0  ;;  %v1100_v26 = vadd.f32 %v4301_v2, %v927_v52 }
 0x1a7   : > { %v1129_v15 = vadd.f32 %v4341_v29, %v1100_v26  ;;  %v3529_v26 = vld [vmem:[#allocation8 + $0x68] sm:$0xff]  ;;  %v1102_v29 = vadd.f32 %v4313_v9, %v929_v41  ;;  %v3528_v9 = vld [vmem:[#allocation8 + $0x60] sm:$0xff] }
 0x1a8   : > { %2084 = vmatpush.bf16.msrb.mxu2 %v3529_v26 }
 0x1a9   : > { %v4361_v50 = vpop.f32.mrf.mxu3  ;;  %v4373_v43 = vpop.f32.mrf.mxu2 }
 0x1ab   : > { %v4349_v23 = vpop.f32.mrf.mxu1 }
 0x1ac   : > { %2085 = vmatpush.bf16.msrb.mxu2 %v3528_v9 }
 0x1ad   : > { %v1444_v16 = vpop.f32.mrf.mxu0 }
 0x1b1   : > { %v4369_v36 = vpop.f32.mrf.mxu3  ;;  %v1157_v63 = vpop.f32.mrf.mxu2 }
 0x1b2   : > { %v1158_v45 = vadd.f32 %v1157_v63, %v1129_v15 }
 0x1b3   : > { %v4353_v39 = vpop.f32.mrf.mxu1 }
 0x1b5   : > { %v1447_v47 = vpop.f32.mrf.mxu0 }
 0x1b9   : > { %v1413_v54 = vpop.f32.mrf.mxu3  ;;  %v1159_v32 = vpop.f32.mrf.mxu2 }
 0x1ba   : > { %v1443_v57 = vadd.f32 %v1442_v30, %v1413_v54  ;;  %v1131_v54 = vadd.f32 %v4349_v23, %v1102_v29  ;;  %v1105_v23 = vadd.f32 %v4327_v19, %v932_v55  ;;  %v4423_v19 = vld [vmem:[#allocation8 + $0x1f8] sm:$0xff]  ;;  %v908_v55 = vadd.f32 %v4347_v1, %v4305_v6  ;;  %v3526_v6 = vld [vmem:[#allocation8 + $0x50] sm:$0xff] }
 0x1bb   : > { %v4359_v48 = vpop.f32.mrf.mxu1  ;;  %3597 = vmatpush.bf16.msra.mxu1 %v4423_v19  ;;  %v3538_v1 = vld [vmem:[#allocation8 + $0xb0] sm:$0xff] }
 0x1bc   : > { %v1160_v53 = vadd.f32 %v1159_v32, %v1131_v54  ;;  %2112 = vmatpush.bf16.msra.mxu3 %v3538_v1  ;;  %v4497_v1 = vld [vmem:[#allocation8 + $0x1c8] sm:$0xff] }
 0x1c1   : > { %v1415_v49 = vpop.f32.mrf.mxu3  ;;  %v1162_v11 = vpop.f32.mrf.mxu2 }
 0x1c2   : > { %v1445_v30 = vadd.f32 %v1444_v16, %v1415_v49  ;;  %v1449_v49 = vpop.f32.mrf.mxu0 }
 0x1c3   : > { %v4367_v18 = vpop.f32.mrf.mxu1 }
 0x1c9   : > { %v1418_v35 = vpop.f32.mrf.mxu3  ;;  %v1164_v32 = vpop.f32.mrf.mxu2 }
 0x1ca   : > { %v1448_v26 = vadd.f32 %v1447_v47, %v1418_v35  ;;  %v4433_v35 = vld [vmem:[#allocation8 + $0x1f0] sm:$0xff]  ;;  %v1452_v9 = vpop.f32.mrf.mxu0 }
 0x1cb   : > { %v4375_v46 = vpop.f32.mrf.mxu1  ;;  %3598 = vmatpush.bf16.msra.mxu1 %v4433_v35 }
 0x1d1   : > { %v1420_v20 = vpop.f32.mrf.mxu3 }
 0x1d3   : > { %v4377_v38 = vpop.f32.mrf.mxu1 }
 0x1db   : > { %v4381_v51 = vpop.f32.mrf.mxu1 }
 0x1e3   : > { %v1471_v5 = vpop.f32.mrf.mxu1 }
 0x1e4   : > { %v1472_v12 = vadd.f32 %v1471_v5, %v1443_v57 }
 0x1e6   : > { %v1491_v2 = vadd.f32 %v1472_v12, %v1158_v45  ;;  %v4797_v45 = vmov 0.0  }
 0x1e8   : > { %v1503_v63 = vmul.f32 %v4392_v0, %v1491_v2  ;;  %v1134_v2 = vadd.f32 %v4353_v39, %v1105_v23  ;;  %v937_v23 = vadd.f32 %v4343_v33, %v908_v55 }
 0x1ea   : > { %v1515_v12 = vadd.f32 %v4397_v59, %v1503_v63  ;;  %v1163_v54 = vadd.f32 %v1162_v11, %v1134_v2 }
 0x1eb   : > { %v1473_v52 = vpop.f32.mrf.mxu1 }
 0x1ec   : > { %v4407_v15 = vadd.f32 %v1515_v12, %v4117_v61  ;;  %v1474_v57 = vadd.f32 %v1473_v52, %v1445_v30  ;;  %v3527_v52 = vld [vmem:[#allocation8 + $0x58] sm:$0xff] }
 0x1ed   : > { %2086 = vmatpush.bf16.msrb.mxu2 %v3527_v52 }
 0x1ee   : > { %v1539_v5 = vrot.slane %v4407_v15, 7  ;;  %v1492_v41 = vadd.f32 %v1474_v57, %v1160_v53  ;;  %v1620_v62 = vpack.c.bf16 %v4407_v15, %v4797_v45  ;;  %v2140_v28 = vrot.slane %v4407_v15, 1  ;;  %v1423_v53 = vpop.f32.mrf.mxu3 }
 0x1f0   : > { %v1504_v16 = vmul.f32 %v4392_v0, %v1492_v41  ;;  %1830 = vmatmul.bf16.vlgmr.msra.gmra.mxu2 %v1620_v62  ;;  %v3242_v61 = vpack.c.bf16 %v1539_v5, %v4797_v45  ;;  %v1450_v41 = vadd.f32 %v1449_v49, %v1420_v20 }
 0x1f1   : > { %2087 = vmatpush.bf16.msrb.mxu2 %v3526_v6  ;;  %v913_v6 = vadd.f32 %v4365_v13, %v4317_v14 }
 0x1f2   : > { %v1516_v29 = vadd.f32 %v4397_v59, %v1504_v16  ;;  %3243 = vmatmul.msk.bf16.vlgmr.msrb.gmra.mxu1 %vm4129_vm3, %v3242_v61  ;;  %v1167_v16 = vpop.f32.mrf.mxu2 }
 0x1f3   : > { %v1476_v63 = vpop.f32.mrf.mxu1 }
 0x1f4   : > { %v4427_v30 = vadd.f32 %v1516_v29, %v4140_v10  ;;  %v1477_v12 = vadd.f32 %v1476_v63, %v1448_v26  ;;  %v1107_v10 = vadd.f32 %v4337_v56, %v934_v7  ;;  %v4447_v56 = vld [vmem:[#allocation8 + $0x1e8] sm:$0xff]  ;;  %v3571_v29 = vld [vmem:[#allocation8 + $0x1b8] sm:$0xff] }
 0x1f5   : > { %3599 = vmatpush.bf16.msra.mxu1 %v4447_v56  ;;  %2366 = vmatpush.bf16.msra.mxu0 %v3571_v29  ;;  %v3535_v29 = vld [vmem:[#allocation8 + $0x98] sm:$0xff] }
 0x1f6   : > { %v1493_v39 = vadd.f32 %v1477_v12, %v1163_v54  ;;  %v1621_v3 = vpack.c.bf16 %v4427_v30, %v4407_v15  ;;  %v2141_v27 = vrot.slane %v4427_v30, 1  ;;  %v1136_v57 = vadd.f32 %v4359_v48, %v1107_v10  ;;  %v3537_v12 = vld [vmem:[#allocation8 + $0xa8] sm:$0xff]  ;;  %v4481_v10 = vld [vmem:[#allocation8 + $0x1d8] sm:$0xff]  ;;  %v3580_v15 = vld [vmem:[#allocation8 + $0x200] sm:$0xff] }
 0x1f7   : > { %v1540_v48 = vrot.slane %v4427_v30, 7  ;;  %2113 = vmatpush.bf16.msra.mxu3 %v3537_v12  ;;  %v3534_v12 = vld [vmem:[#allocation8 + $0x90] sm:$0xff] }
 0x1f8   : > { %v1505_v47 = vmul.f32 %v4392_v0, %v1493_v39  ;;  %1859 = vmatmul.bf16.vlgmr.msrb.gmra.mxu3 %v1621_v3  ;;  %v4441_v11 = vpack.c.bf16 %v2141_v27, %v2140_v28  ;;  %v1165_v17 = vadd.f32 %v1164_v32, %v1136_v57  ;;  %v1110_v32 = vadd.f32 %v4345_v34, %v937_v23  ;;  %v4488_v23 = vld [vmem:[#allocation8 + $0x1d0] sm:$0xff] }
 0x1f9   : > { %v910_v34 = vadd.f32 %v4357_v42, %v4311_v8  ;;  %v1453_v39 = vadd.f32 %v1452_v9, %v1423_v53  ;;  %v3570_v42 = vld [vmem:[#allocation8 + $0x1b0] sm:$0xff]  ;;  %v1454_v53 = vpop.f32.mrf.mxu0 }
 0x1fa   : > { %v1517_v62 = vadd.f32 %v4397_v59, %v1505_v47  ;;  %v1139_v60 = vadd.f32 %v4367_v18, %v1110_v32  ;;  %v1425_v47 = vpop.f32.mrf.mxu3  ;;  %v3525_v18 = vld [vmem:[#allocation8 + $0x48] sm:$0xff]  ;;  %v1169_v9 = vpop.f32.mrf.mxu2  ;;  %2367 = vmatpush.bf16.msra.mxu0 %v3570_v42 }
 0x1fb   : > { %v1478_v61 = vpop.f32.mrf.mxu1  ;;  %2088 = vmatpush.bf16.msrb.mxu2 %v3525_v18  ;;  %v3587_v18 = vld [vmem:[#allocation8 + $0x238] sm:$0xff] }
 0x1fc   : > { %v4451_v2 = vadd.f32 %v1517_v62, %v4146_v21  ;;  %v1479_v26 = vadd.f32 %v1478_v61, %v1450_v41  ;;  %v4459_v21 = vld [vmem:[#allocation8 + $0x1e0] sm:$0xff]  ;;  %v1168_v57 = vadd.f32 %v1167_v16, %v1139_v60 }
 0x1fd   : > { %3600 = vmatpush.bf16.msra.mxu1 %v4459_v21  ;;  %v3536_v62 = vld [vmem:[#allocation8 + $0xa0] sm:$0xff] }
 0x1fe   : > { %v2142_v20 = vrot.slane %v4451_v2, 1  ;;  %v1494_v49 = vadd.f32 %v1479_v26, %v1165_v17  ;;  %v1622_v33 = vpack.c.bf16 %v4451_v2, %v4427_v30  ;;  %v1541_v63 = vrot.slane %v4451_v2, 7  ;;  %2114 = vmatpush.bf16.msra.mxu3 %v3536_v62  ;;  %v3524_v26 = vld [vmem:[#allocation8 + $0x40] sm:$0xff] }
 0x1ff   : > { %2089 = vmatpush.bf16.msrb.mxu2 %v3524_v26  ;;  %v915_v62 = vadd.f32 %v4373_v43, %v4333_v22 }
 0x200   : > { %v1506_v7 = vmul.f32 %v4392_v0, %v1494_v49  ;;  %1835 = vmatmul.bf16.gmra.mxu2 %v1622_v33  ;;  %1888 = vmatmul.bf16.vlgmr.msrb.gmra.mxu0 %v1622_v33  ;;  %v4467_v54 = vpack.c.bf16 %v1541_v63, %v1540_v48  ;;  %v4471_v52 = vpack.c.bf16 %v2142_v20, %v2141_v27 }
 0x201   : > { %v939_v27 = vadd.f32 %v4351_v31, %v910_v34  ;;  %3601 = vmatpush.bf16.msra.mxu1 %v4481_v10  ;;  %v3569_v31 = vld [vmem:[#allocation8 + $0x1a8] sm:$0xff]  ;;  %v1455_v33 = vadd.f32 %v1454_v53, %v1425_v47  ;;  %v942_v34 = vadd.f32 %v4361_v50, %v913_v6  ;;  %v1457_v50 = vpop.f32.mrf.mxu0  ;;  %v944_v26 = vadd.f32 %v4369_v36, %v915_v62 }
 0x202   : > { %v1518_v3 = vadd.f32 %v4397_v59, %v1506_v7  ;;  %3248 = vmatmul.msk.bf16.gmra.mxu1 %vm4155_vm4, %v4467_v54  ;;  %2368 = vmatpush.bf16.msra.mxu0 %v3569_v31  ;;  %v3533_v53 = vld [vmem:[#allocation8 + $0x88] sm:$0xff] }
 0x203   : > { %v1481_v55 = vpop.f32.mrf.mxu1  ;;  %2115 = vmatpush.bf16.msra.mxu3 %v3535_v29  ;;  %2424 = vmatpush.bf16.msra.mxu2 %v3587_v18 }
 0x204   : > { %v4485_v41 = vadd.f32 %v1518_v3, %v4172_v40  ;;  %v1482_v8 = vadd.f32 %v1481_v55, %v1453_v39  ;;  %v1112_v40 = vadd.f32 %v4355_v24, %v939_v27  ;;  %v3568_v24 = vld [vmem:[#allocation8 + $0x1a0] sm:$0xff]  ;;  %v1428_v39 = vpop.f32.mrf.mxu3 }
 0x205   : > { %3602 = vmatpush.bf16.msra.mxu1 %v4488_v23 }
 0x206   : > { %v1495_v61 = vadd.f32 %v1482_v8, %v1168_v57  ;;  %v1623_v17 = vpack.c.bf16 %v4485_v41, %v4451_v2  ;;  %v1141_v49 = vadd.f32 %v4375_v46, %v1112_v40  ;;  %v4506_v46 = vld [vmem:[#allocation8 + $0x1c0] sm:$0xff]  ;;  %v1542_v55 = vrot.slane %v4485_v41, 7  ;;  %2369 = vmatpush.bf16.msra.mxu0 %v3568_v24  ;;  %v1172_v57 = vpop.f32.mrf.mxu2  ;;  %v3586_v24 = vld [vmem:[#allocation8 + $0x230] sm:$0xff] }
 0x207   : > { %2116 = vmatpush.bf16.msra.mxu3 %v3534_v12  ;;  %v3532_v40 = vld [vmem:[#allocation8 + $0x80] sm:$0xff]  ;;  %2425 = vmatpush.bf16.msra.mxu2 %v3586_v24 }
 0x208   : > { %v1507_v16 = vmul.f32 %v4392_v0, %v1495_v61  ;;  %1864 = vmatmul.bf16.gmra.mxu3 %v1623_v17  ;;  %v1170_v60 = vadd.f32 %v1169_v9, %v1141_v49  ;;  %v3567_v9 = vld [vmem:[#allocation8 + $0x198] sm:$0xff]  ;;  %v1458_v61 = vadd.f32 %v1457_v50, %v1428_v39  ;;  %v3564_v39 = vld [vmem:[#allocation8 + $0x180] sm:$0xff] }
 0x209   : > { %3603 = vmatpush.bf16.msra.mxu1 %v4497_v1  ;;  %v1459_v36 = vpop.f32.mrf.mxu0 }
 0x20a   : > { %v1519_v32 = vadd.f32 %v4397_v59, %v1507_v16  ;;  %2370 = vmatpush.bf16.msra.mxu0 %v3567_v9  ;;  %v3566_v16 = vld [vmem:[#allocation8 + $0x190] sm:$0xff]  ;;  %v3585_v9 = vld [vmem:[#allocation8 + $0x228] sm:$0xff] }
 0x20b   : > { %v1483_v7 = vpop.f32.mrf.mxu1  ;;  %2117 = vmatpush.bf16.msra.mxu3 %v3533_v53  ;;  %2426 = vmatpush.bf16.msra.mxu2 %v3585_v9 }
 0x20c   : > { %v4503_v14 = vadd.f32 %v1519_v32, %v4176_v44  ;;  %v1484_v13 = vadd.f32 %v1483_v7, %v1455_v33  ;;  %v1115_v44 = vadd.f32 %v4363_v58, %v942_v34  ;;  %v1430_v49 = vpop.f32.mrf.mxu3  ;;  %v1117_v33 = vadd.f32 %v4371_v37, %v944_v26  ;;  %v3565_v7 = vld [vmem:[#allocation8 + $0x188] sm:$0xff] }
 0x20d   : > { %3604 = vmatpush.bf16.msra.mxu1 %v4506_v46  ;;  %v1460_v34 = vadd.f32 %v1459_v36, %v1430_v49 }
 0x20e   : > { %v1496_v3 = vadd.f32 %v1484_v13, %v1170_v60  ;;  %v1624_v47 = vpack.c.bf16 %v4503_v14, %v4485_v41  ;;  %v1543_v27 = vrot.slane %v4503_v14, 7  ;;  %v1144_v58 = vadd.f32 %v4377_v38, %v1115_v44  ;;  %2371 = vmatpush.bf16.msra.mxu0 %v3566_v16  ;;  %v1174_v12 = vpop.f32.mrf.mxu2 }
 0x20f   : > { %2118 = vmatpush.bf16.msra.mxu3 %v3532_v40 }
 0x210   : > { %v1508_v8 = vmul.f32 %v4392_v0, %v1496_v3  ;;  %1840 = vmatmul.bf16.gmra.mxu2 %v1624_v47  ;;  %1893 = vmatmul.bf16.gmra.mxu0 %v1624_v47  ;;  %v4518_v42 = vpack.c.bf16 %v1543_v27, %v1542_v55  ;;  %v1173_v22 = vadd.f32 %v1172_v57, %v1144_v58  ;;  %v4798_v47 = vld [vmem:[#allocation16_spill] sm:$0xff]  ;;  %v4799_v58 = vld [vmem:[#allocation17_spill] sm:$0xff] }
 0x212   : > { %v1520_v17 = vadd.f32 %v4397_v59, %v1508_v8  ;;  %3253 = vmatmul.msk.bf16.gmra.mxu1 %vm4155_vm4, %v4518_v42  ;;  %2372 = vmatpush.bf16.msra.mxu0 %v3565_v7 }
 0x213   : > { %v1486_v31 = vpop.f32.mrf.mxu1  ;;  %3605 = vmatpush.bf16.msrb.mxu3 %v3587_v18 }
 0x214   : > { %v4530_v43 = vadd.f32 %v1520_v17, %v4191_v4  ;;  %v1487_v38 = vadd.f32 %v1486_v31, %v1458_v61  ;;  %v1146_v4 = vadd.f32 %v4381_v51, %v1117_v33  ;;  %v3584_v17 = vld [vmem:[#allocation8 + $0x220] sm:$0xff] }
 0x215   : > { %2427 = vmatpush.bf16.msra.mxu2 %v3584_v17 }
 0x216   : > { %v1497_v29 = vadd.f32 %v1487_v38, %v1173_v22  ;;  %v1625_v6 = vpack.c.bf16 %v4530_v43, %v4503_v14  ;;  %v1175_v3 = vadd.f32 %v1174_v12, %v1146_v4  ;;  %v1544_v8 = vrot.slane %v4530_v43, 7  ;;  %2373 = vmatpush.bf16.msra.mxu0 %v3564_v39 }
 0x217   : > { %3606 = vmatpush.bf16.msrb.mxu3 %v3586_v24  ;;  %v2145_v30 = vrot.slane %v4530_v43, 1 }
 0x218   : > { %v1509_v32 = vmul.f32 %v4392_v0, %v1497_v29  ;;  %1869 = vmatmul.bf16.gmra.mxu3 %v1625_v6 }
 0x21a   : > { %v1521_v60 = vadd.f32 %v4397_v59, %v1509_v32  ;;  %2395 = vmatpush.bf16.msrb.mxu0 %v4423_v19  ;;  %v2143_v19 = vrot.slane %v4485_v41, 1 }
 0x21b   : > { %v1488_v13 = vpop.f32.mrf.mxu1  ;;  %3607 = vmatpush.bf16.msrb.mxu3 %v3585_v9 }
 0x21c   : > { %v4539_v37 = vadd.f32 %v1521_v60, %v4798_v47  ;;  %v1489_v50 = vadd.f32 %v1488_v13, %v1460_v34 }
 0x21e   : > { %v1498_v57 = vadd.f32 %v1489_v50, %v1175_v3  ;;  %v1626_v44 = vpack.c.bf16 %v4539_v37, %v4530_v43  ;;  %v1545_v51 = vrot.slane %v4539_v37, 7  ;;  %2396 = vmatpush.bf16.msrb.mxu0 %v4433_v35  ;;  %v3410_v35 = vpack.c.bf16 %v2143_v19, %v2142_v20 }
 0x21f   : > { %3608 = vmatpush.bf16.msrb.mxu3 %v3584_v17  ;;  %v3395_v20 = vpack.c.bf16 %v2140_v28, %v4797_v45  ;;  %v3272_v28 = vpack.c.bf16 %v1544_v8, %v1543_v27  ;;  %v2146_v2 = vrot.slane %v4539_v37, 1 }
 0x220   : > { %v1510_v18 = vmul.f32 %v4392_v0, %v1498_v57  ;;  %1845 = vmatmul.bf16.gmra.mxu2 %v1626_v44  ;;  %1898 = vmatmul.bf16.gmra.mxu0 %v1626_v44  ;;  %v3257_v53 = vpack.c.bf16 %v1545_v51, %v1544_v8 }
 0x221   : > { %v3404_v27 = vpack.c.bf16 %v2146_v2, %v2145_v30 }
 0x222   : > { %v1522_v62 = vadd.f32 %v4397_v59, %v1510_v18  ;;  %3258 = vmatmul.msk.bf16.gmra.mxu1 %vm4155_vm4, %v3257_v53  ;;  %2397 = vmatpush.bf16.msrb.mxu0 %v4447_v56  ;;  %v3262_v59 = vpack.c.bf16 %v1540_v48, %v1539_v5  ;;  %v3583_v56 = vld [vmem:[#allocation8 + $0x218] sm:$0xff]  ;;  %v3582_v5 = vld [vmem:[#allocation8 + $0x210] sm:$0xff]  ;;  %v3267_v48 = vpack.c.bf16 %v1542_v55, %v1541_v63 }
 0x223   : > { %2428 = vmatpush.bf16.msra.mxu2 %v3583_v56  ;;  %3609 = vmatpush.bf16.msrb.mxu3 %v3583_v56 }
 0x224   : > { %v1530_v61 = vadd.f32 %v1522_v62, %v4799_v58 }
 0x226   : > { %v1627_v0 = vpack.c.bf16 %v1530_v61, %v4539_v37  ;;  %2398 = vmatpush.bf16.msrb.mxu0 %v4459_v21  ;;  %v1628_v31 = vpack.c.bf16 0.0, %v1530_v61  ;;  %v2144_v21 = vrot.slane %v4503_v14, 1  ;;  %v2147_v45 = vrot.slane %v1530_v61, 1 }
 0x227   : > { %2429 = vmatpush.bf16.msra.mxu2 %v3582_v5  ;;  %3610 = vmatpush.bf16.msrb.mxu3 %v3582_v5  ;;  %v1546_v41 = vrot.slane %v1530_v61, 7 }
 0x228   : > { %1874 = vmatmul.bf16.gmra.mxu3 %v1627_v0  ;;  %v3416_v63 = vpack.c.bf16 %v2147_v45, %v2146_v2  ;;  %v3401_v14 = vpack.c.bf16 %v2144_v21, %v2143_v19  ;;  %v3428_v26 = vpack.c.bf16 0.0, %v2147_v45 }
 0x22a   : > { %2399 = vmatpush.bf16.msrb.mxu0 %v4481_v10  ;;  %v3413_v10 = vpack.c.bf16 %v2145_v30, %v2144_v21 }
 0x22e   : > { %2400 = vmatpush.bf16.msrb.mxu0 %v4488_v23  ;;  %v3581_v23 = vld [vmem:[#allocation8 + $0x208] sm:$0xff] }
 0x22f   : > { %2430 = vmatpush.bf16.msra.mxu2 %v3581_v23  ;;  %3611 = vmatpush.bf16.msrb.mxu3 %v3581_v23 }
 0x230   : > { %1903 = vmatmul.bf16.gmra.mxu0 %v1628_v31  ;;  %3263 = vmatmul.msk.bf16.vlgmr.msrb.gmra.mxu2 %vm4155_vm4, %v3262_v59 }
 0x232   : > { %3411 = vmatmul.msk.bf16.vlgmr.msra.gmra.mxu1 %vm4222_vm6, %v3410_v35  ;;  %2401 = vmatpush.bf16.msrb.mxu0 %v4497_v1  ;;  %v3277_v1 = vpack.c.bf16 %v1546_v41, %v1545_v51 }
 0x233   : > { %2431 = vmatpush.bf16.msra.mxu2 %v3580_v15  ;;  %3612 = vmatpush.bf16.msrb.mxu3 %v3580_v15 }
 0x236   : > { %2402 = vmatpush.bf16.msrb.mxu0 %v4506_v46  ;;  %v3296_v46 = vpack.c.bf16 0.0, %v1546_v41 }
 0x238   : > { %3283 = vmatmul.msk.bf16.vlgmr.msra.gmra.mxu3 %vm4155_vm4, %v4467_v54 }
 0x240   : > { %3268 = vmatmul.msk.bf16.gmra.mxu2 %vm4155_vm4, %v3267_v48  ;;  %3396 = vmatmul.msk.bf16.vlgmr.msra.gmra.mxu0 %vm4236_vm7, %v3395_v20 }
 0x242   : > { %3414 = vmatmul.msk.bf16.gmra.mxu1 %vm4222_vm6, %v3413_v10 }
 0x248   : > { %3288 = vmatmul.msk.bf16.gmra.mxu3 %vm4155_vm4, %v4518_v42 }
 0x250   : > { %3273 = vmatmul.msk.bf16.gmra.mxu2 %vm4155_vm4, %v3272_v28  ;;  %3399 = vmatmul.msk.bf16.gmra.mxu0 %vm4222_vm6, %v4471_v52 }
 0x252   : > { %3417 = vmatmul.msk.bf16.gmra.mxu1 %vm4222_vm6, %v3416_v63 }
 0x258   : > { %3293 = vmatmul.msk.bf16.gmra.mxu3 %vm4155_vm4, %v3257_v53 }
 0x260   : > { %3278 = vmatmul.msk.bf16.gmra.mxu2 %vm4155_vm4, %v3277_v1  ;;  %3402 = vmatmul.msk.bf16.gmra.mxu0 %vm4222_vm6, %v3401_v14 }
 0x268   : > { %3297 = vmatmul.msk.bf16.gmra.mxu3 %vm4279_vm8, %v3296_v46 }
 0x26f   : > { %v2062_v16 = vpop.f32.mrf.mxu1 }
 0x270   : > { %3405 = vmatmul.msk.bf16.gmra.mxu0 %vm4222_vm6, %v3404_v27  ;;  %3420 = vmatmul.msk.bf16.vlgmr.msra.gmra.mxu2 %vm4222_vm6, %v4471_v52 }
 0x273   : > { %v1831_v42 = vpop.f32.mrf.mxu2 }
 0x277   : > { %v2064_v6 = vpop.f32.mrf.mxu1 }
 0x278   : > { %3429 = vmatmul.msk.bf16.vlgmr.msrb.gmra.mxu3 %vm4321_vm9, %v3428_v26 }
 0x27b   : > { %v1833_v22 = vpop.f32.mrf.mxu2  ;;  %v1860_v43 = vpop.f32.mrf.mxu3 }
 0x27c   : > { %v1861_v38 = vadd.f32 %v1860_v43, %v1831_v42 }
 0x27d   : > { %v1889_v29 = vpop.f32.mrf.mxu0 }
 0x27e   : > { %v1890_v49 = vadd.f32 %v1889_v29, %v1861_v38 }
 0x27f   : > { %v2067_v12 = vpop.f32.mrf.mxu1 }
 0x280   : > { %3408 = vmatmul.msk.bf16.vlgmr.msrb.gmra.mxu0 %vm4222_vm6, %v4441_v11  ;;  %3423 = vmatmul.msk.bf16.gmra.mxu2 %vm4222_vm6, %v3401_v14  ;;  %v2063_v52 = vadd.f32 %v2062_v16, %v1890_v49 }
 0x283   : > { %v1836_v33 = vpop.f32.mrf.mxu2  ;;  %v1862_v32 = vpop.f32.mrf.mxu3 }
 0x284   : > { %v1863_v24 = vadd.f32 %v1862_v32, %v1833_v22 }
 0x285   : > { %v1891_v7 = vpop.f32.mrf.mxu0 }
 0x286   : > { %v1892_v36 = vadd.f32 %v1891_v7, %v1863_v24 }
 0x287   : > { %v2069_v47 = vpop.f32.mrf.mxu1 }
 0x288   : > { %v2065_v4 = vadd.f32 %v2064_v6, %v1892_v36 }
 0x28b   : > { %v1838_v34 = vpop.f32.mrf.mxu2  ;;  %v1865_v60 = vpop.f32.mrf.mxu3 }
 0x28c   : > { %v1866_v13 = vadd.f32 %v1865_v60, %v1836_v33 }
 0x28d   : > { %v1894_v39 = vpop.f32.mrf.mxu0 }
 0x28e   : > { %v1895_v3 = vadd.f32 %v1894_v39, %v1866_v13 }
 0x28f   : > { %v2072_v62 = vpop.f32.mrf.mxu1 }
 0x290   : > { %3426 = vmatmul.msk.bf16.gmra.mxu2 %vm4222_vm6, %v3404_v27  ;;  %v4627_v11 = vadd.f32 %v2067_v12, %v1895_v3 }
 0x293   : > { %v1841_v37 = vpop.f32.mrf.mxu2  ;;  %v1867_v50 = vpop.f32.mrf.mxu3 }
 0x294   : > { %v1868_v57 = vadd.f32 %v1867_v50, %v1838_v34 }
 0x295   : > { %v1896_v44 = vpop.f32.mrf.mxu0 }
 0x296   : > { %v1897_v8 = vadd.f32 %v1896_v44, %v1868_v57 }
 0x297   : > { %v2074_v56 = vpop.f32.mrf.mxu1 }
 0x298   : > { %v4629_v51 = vadd.f32 %v2069_v47, %v1897_v8 }
 0x29b   : > { %v1843_v18 = vpop.f32.mrf.mxu2  ;;  %v1870_v53 = vpop.f32.mrf.mxu3 }
 0x29c   : > { %v1871_v9 = vadd.f32 %v1870_v53, %v1841_v37 }
 0x29d   : > { %v1899_v58 = vpop.f32.mrf.mxu0 }
 0x29e   : > { %v1900_v61 = vadd.f32 %v1899_v58, %v1871_v9  ;;  %v4660_v58 = vld [vmem:[%s4752_s8] ss:$0 sm:$0xff] }
 0x29f   : > { %v2077_v2 = vpop.f32.mrf.mxu1 }
 0x2a0   : > { %v4631_v0 = vadd.f32 %v2072_v62, %v1900_v61 }
 0x2a3   : > { %v1846_v17 = vpop.f32.mrf.mxu2  ;;  %v1872_v19 = vpop.f32.mrf.mxu3 }
 0x2a4   : > { %v1873_v59 = vadd.f32 %v1872_v19, %v1843_v18  ;;  %v4665_v19 = vld [vmem:[%s4753_s9] ss:$0 sm:$0xff] }
 0x2a5   : > { %v1901_v31 = vpop.f32.mrf.mxu0 }
 0x2a6   : > { %v1902_v35 = vadd.f32 %v1901_v31, %v1873_v59 }
 0x2a7   : > { %v2079_v42 = vpop.f32.mrf.mxu1 }
 0x2a8   : > { %v4633_v40 = vadd.f32 %v2074_v56, %v1902_v35 }
 0x2ab   : > { %v1848_v5 = vpop.f32.mrf.mxu2  ;;  %v1875_v30 = vpop.f32.mrf.mxu3 }
 0x2ac   : > { %v1876_v48 = vadd.f32 %v1875_v30, %v1846_v17 }
 0x2ad   : > { %v1904_v20 = vpop.f32.mrf.mxu0 }
 0x2ae   : > { %v1905_v21 = vadd.f32 %v1904_v20, %v1876_v48 }
 0x2af   : > { %v2409_v38 = vpop.f32.mrf.mxu1 }
 0x2b0   : > { %v2078_v57 = vadd.f32 %v2077_v2, %v1905_v21 }
 0x2b3   : > { %v1877_v54 = vpop.f32.mrf.mxu3  ;;  %v2091_v10 = vpop.f32.mrf.mxu2 }
 0x2b4   : > { %v1878_v23 = vadd.f32 %v1877_v54, %v1848_v5  ;;  %v2092_v15 = vadd.f32 %v2091_v10, %v2063_v52 }
 0x2b5   : > { %v1906_v45 = vpop.f32.mrf.mxu0 }
 0x2b6   : > { %v1907_v28 = vadd.f32 %v1906_v45, %v1878_v23 }
 0x2b7   : > { %v2411_v52 = vpop.f32.mrf.mxu1 }
 0x2b8   : > { %v2080_v31 = vadd.f32 %v2079_v42, %v1907_v28 }
 0x2bb   : > { %v2093_v63 = vpop.f32.mrf.mxu2  ;;  %v2120_v41 = vpop.f32.mrf.mxu3 }
 0x2bc   : > { %v2094_v1 = vadd.f32 %v2093_v63, %v2065_v4  ;;  %v2121_v14 = vadd.f32 %v2120_v41, %v2092_v15 }
 0x2bd   : > { %v2375_v46 = vpop.f32.mrf.mxu0 }
 0x2bf   : > { %v4649_v7 = vpop.f32.mrf.mxu1 }
 0x2c3   : > { %v2096_v55 = vpop.f32.mrf.mxu2  ;;  %v2122_v27 = vpop.f32.mrf.mxu3 }
 0x2c4   : > { %v4635_v16 = vadd.f32 %v2122_v27, %v2094_v1  ;;  %v2097_v5 = vadd.f32 %v2096_v55, %v4627_v11 }
 0x2c5   : > { %v2377_v26 = vpop.f32.mrf.mxu0 }
 0x2c7   : > { %v4655_v13 = vpop.f32.mrf.mxu1 }
 0x2cb   : > { %v4637_v25 = vpop.f32.mrf.mxu2  ;;  %v2125_v22 = vpop.f32.mrf.mxu3 }
 0x2cc   : > { %v2126_v23 = vadd.f32 %v2125_v22, %v2097_v5 }
 0x2cd   : > { %v2380_v43 = vpop.f32.mrf.mxu0 }
 0x2ce   : > { %v2410_v20 = vadd.f32 %v2409_v38, %v2380_v43 }
 0x2cf   : > { %v2419_v50 = vpop.f32.mrf.mxu1 }
 0x2d3   : > { %v4639_v29 = vpop.f32.mrf.mxu2  ;;  %v4641_v6 = vpop.f32.mrf.mxu3 }
 0x2d5   : > { %v2382_v49 = vpop.f32.mrf.mxu0 }
 0x2d7   : > { %v2421_v30 = vpop.f32.mrf.mxu1 }
 0x2db   : > { %v4643_v33 = vpop.f32.mrf.mxu2  ;;  %v4645_v32 = vpop.f32.mrf.mxu3 }
 0x2dd   : > { %v4647_v24 = vpop.f32.mrf.mxu0 }
 0x2e3   : > { %v2106_v36 = vpop.f32.mrf.mxu2  ;;  %v4651_v12 = vpop.f32.mrf.mxu3 }
 0x2e4   : > { %v2107_v44 = vadd.f32 %v2106_v36, %v2078_v57  ;;  %v2099_v36 = vadd.f32 %v4637_v25, %v4629_v51 }
 0x2e5   : > { %v4653_v4 = vpop.f32.mrf.mxu0 }
 0x2eb   : > { %v2108_v34 = vpop.f32.mrf.mxu2  ;;  %v2135_v60 = vpop.f32.mrf.mxu3 }
 0x2ec   : > { %v2136_v9 = vadd.f32 %v2135_v60, %v2107_v44  ;;  %v2109_v48 = vadd.f32 %v2108_v34, %v2080_v31  ;;  %v2412_v34 = vadd.f32 %v2411_v52, %v2382_v49 }
 0x2ed   : > { %v2390_v39 = vpop.f32.mrf.mxu0 }
 0x2ee   : > { %v2420_v8 = vadd.f32 %v2419_v50, %v2390_v39 }
 0x2f3   : > { %v2137_v3 = vpop.f32.mrf.mxu3  ;;  %v2433_v47 = vpop.f32.mrf.mxu2 }
 0x2f4   : > { %v2138_v15 = vadd.f32 %v2137_v3, %v2109_v48  ;;  %v2128_v3 = vadd.f32 %v4641_v6, %v2099_v36  ;;  %v2415_v6 = vadd.f32 %v4649_v7, %v4647_v24 }
 0x2f5   : > { %v2392_v37 = vpop.f32.mrf.mxu0 }
 0x2f6   : > { %v2422_v21 = vadd.f32 %v2421_v30, %v2392_v37 }
 0x2fb   : > { %v2435_v18 = vpop.f32.mrf.mxu2  ;;  %v2448_v53 = vpop.f32.mrf.mxu3 }
 0x2fc   : > { %v2449_v62 = vadd.f32 %v2448_v53, %v2420_v8 }
 0x2fd   : > { %v2404_v61 = vpop.f32.mrf.mxu0 }
 0x2fe   : > { %v2459_v17 = vadd.f32 %v2449_v62, %v2136_v9  ;;  %v2405_v59 = vadd.f32 %v2404_v61, %v2375_v46 }
 0x300   : > { %v2471_v35 = vmul.f32 %v4660_v58, %v2459_v17  ;;  %v2434_v56 = vadd.f32 %v2433_v47, %v2405_v59 }
 0x302   : > { %v2483_v54 = vadd.f32 %v4665_v19, %v2471_v35  ;;  %v2453_v10 = vadd.f32 %v2434_v56, %v2121_v14 }
 0x303   : > { %v2438_v45 = vpop.f32.mrf.mxu2  ;;  %v2450_v2 = vpop.f32.mrf.mxu3 }
 0x304   : > { %v2491_v63 = vmax.f32 %v2483_v54, 0.0  ;;  %v2465_v28 = vmul.f32 %v4660_v58, %v2453_v10  ;;  %v2439_v41 = vadd.f32 %v2438_v45, %v2410_v20  ;;  %v2451_v1 = vadd.f32 %v2450_v2, %v2422_v21 }
 0x305   : > { %v2406_v46 = vpop.f32.mrf.mxu0 }
 0x306   : > { %2499 = vst [vmem:[%s4673_s27 + $0x30] sm:$0xff] %v2491_v63  ;;  %v2477_v11 = vadd.f32 %v4665_v19, %v2465_v28  ;;  %v2455_v55 = vadd.f32 %v2439_v41, %v2126_v23  ;;  %v2460_v14 = vadd.f32 %v2451_v1, %v2138_v15  ;;  %v2407_v27 = vadd.f32 %v2406_v46, %v2377_v26 }
 0x308   : > { %v2485_v42 = vmax.f32 %v2477_v11, 0.0  ;;  %v2467_v22 = vmul.f32 %v4660_v58, %v2455_v55  ;;  %v2472_v43 = vmul.f32 %v4660_v58, %v2460_v14  ;;  %v2436_v38 = vadd.f32 %v2435_v18, %v2407_v27 }
 0x30a   : > { %2493 = vst [vmem:[%s4673_s27] sm:$0xff] %v2485_v42  ;;  %v2479_v60 = vadd.f32 %v4665_v19, %v2467_v22  ;;  %v2484_v39 = vadd.f32 %v4665_v19, %v2472_v43  ;;  %v2454_v26 = vadd.f32 %v2436_v38, %v4635_v16  ;;  %v2102_v16 = vadd.f32 %v4639_v29, %v4631_v0 }
 0x30b   : > { %v2440_v47 = vpop.f32.mrf.mxu2  ;;  %v2104_v0 = vadd.f32 %v4643_v33, %v4633_v40  ;;  %v2417_v29 = vadd.f32 %v4655_v13, %v4653_v4 }
 0x30c   : > { %v2487_v37 = vmax.f32 %v2479_v60, 0.0  ;;  %v2492_v50 = vmax.f32 %v2484_v39, 0.0  ;;  %v2466_v57 = vmul.f32 %v4660_v58, %v2454_v26  ;;  %v2441_v44 = vadd.f32 %v2440_v47, %v2412_v34 }
 0x30d   : > { %v2131_v53 = vadd.f32 %v4645_v32, %v2102_v16  ;;  %v2133_v32 = vadd.f32 %v4651_v12, %v2104_v0 }
 0x30e   : > { %2495 = vst [vmem:[%s4673_s27 + $0x10] sm:$0xff] %v2487_v37  ;;  %v2478_v51 = vadd.f32 %v4665_v19, %v2466_v57  ;;  %v2456_v25 = vadd.f32 %v2441_v44, %v2128_v3 }
 0x30f   : > { %2500 = vst [vmem:[%s4673_s27 + $0x38] sm:$0xff] %v2492_v50 }
 0x310   : > { %v2486_v49 = vmax.f32 %v2478_v51, 0.0  ;;  %v2468_v52 = vmul.f32 %v4660_v58, %v2456_v25 }
 0x312   : > { %2494 = vst [vmem:[%s4673_s27 + $0x8] sm:$0xff] %v2486_v49  ;;  %v2480_v8 = vadd.f32 %v4665_v19, %v2468_v52 }
 0x313   : > { %v2443_v18 = vpop.f32.mrf.mxu2 }
 0x314   : > { %v2488_v9 = vmax.f32 %v2480_v8, 0.0  ;;  %v2444_v62 = vadd.f32 %v2443_v18, %v2415_v6 }
 0x316   : > { %2496 = vst [vmem:[%s4673_s27 + $0x18] sm:$0xff] %v2488_v9  ;;  %v2457_v61 = vadd.f32 %v2444_v62, %v2131_v53 }
 0x318   : > { %v2469_v17 = vmul.f32 %v4660_v58, %v2457_v61 }
 0x31a   : > { %v2481_v24 = vadd.f32 %v4665_v19, %v2469_v17 }
 0x31b   : > { %v2445_v7 = vpop.f32.mrf.mxu2 }
 0x31c   : > { %v2489_v59 = vmax.f32 %v2481_v24, 0.0  ;;  %v2446_v31 = vadd.f32 %v2445_v7, %v2417_v29 }
 0x31e   : > { %2497 = vst [vmem:[%s4673_s27 + $0x20] sm:$0xff] %v2489_v59  ;;  %v2458_v40 = vadd.f32 %v2446_v31, %v2133_v32 }
 0x320   : > { %v2470_v33 = vmul.f32 %v4660_v58, %v2458_v40 }
 0x322   : > { %v2482_v4 = vadd.f32 %v4665_v19, %v2470_v33 }
 0x324   : > { %v2490_v13 = vmax.f32 %v2482_v4, 0.0 }
 0x326   : > { %2498 = vst [vmem:[%s4673_s27 + $0x28] sm:$0xff] %v2490_v13 }
 0x327   : > { %3851 = shalt.err (!%p3848_p10)
}
 0x328   : > { %s3909_s25 = smov 128   ;;  %s3910_s27 = smov 8  }
 0x329   : > { %3627 = dma.vmem_to_hbm [thread:$0]  (%p4049_p7), %s2515_s12, 1024, %s2517_s26, %s2502_s17, %s3909_s25, %s3909_s25, %s3910_s27  }
 0x32a PF: > { %s2531_s7 = sand.u32 1, %s3886_s13   ;;  %p4804_p12 = scmp.ge.s32.totalorder %s3898_s16, 2 }
 0x32b   : > { %s2532_s4 = scalar_lea.sflag [#allocation4], %s2531_s7 }
 0x32c   : > { %p3644_p13 = pnand %p4804_p12, %p4001_p6 }
 0x32e   : > { %p3645_p0 = pneg %p3644_p13 }
 0x330   : > { %3881 = dma.done.wait (%p3645_p0), %s2532_s4, 1024  }
 0x331   : > { %3883 = vsyncadd (%p3645_p0), %s2532_s4, 4294966272  ;;  %s4805_s19 = sld [smem:[#allocation15_spill]]  ;;  %p25_p3 = scmp.ge.s32.totalorder %s4033_s23, 4  }
 0x332   : > { %s4806_s13 = smov %s3890_s14  ;;  %s4807_s14 = smov %s3894_s15 }
 0x333   : > { %s4809_s16 = smov %s4033_s23  ;;  %27 = sbr.rel (!%p25_p3) target bundleno = 11 (0xb), region = 121 }
 0x337   : > { %s4808_s15 = smov %s4805_s19 }
 0x338   :  { %2538 = vsyncpa [#allocation3], 1 }
 0x339   :  { %2540 = vsyncpa [#allocation3 + $0x1], 1 }
 0x33a   :  { %2541 = vsyncpa [#allocation6], 1 }
 0x33b   :  { %2542 = vsyncpa [#allocation9], 1 }
 0x33c   :  { %2543 = vsyncpa [#allocation4], 1 }
 0x33d   :  { %2545 = vsyncpa [#allocation4 + $0x1], 1 }

</bundles_post_ra>
